<compile_context>
chip_gen: v7x
topology: tpu7x:2x2x1
jax: 0.10.0
libtpu: 0.0.40
codegen_flags: <defaults>
</compile_context>

<pallas_src>
import functools
import math

import jax
import jax.numpy as jnp
from jax.experimental import pallas as pl
from jax.experimental.pallas import tpu as pltpu


VMEM_SPEC = pl.BlockSpec(memory_space=pltpu.MemorySpace.VMEM)
LANE = 128  # classifier output padded to one full lane width (unmasked store)


# ----------------------------------------------------------------------------
# In-kernel helpers (VPU / EUP ops only)
# ----------------------------------------------------------------------------
def _erf(x):
    # Abramowitz & Stegun 7.1.26 polynomial erf (|err| < 1.5e-7): reproduces
    # HF BERT's exact (erf) GELU with ops Mosaic lowers cleanly.
    p = 0.3275911
    a1, a2, a3, a4, a5 = 0.254829592, -0.284496736, 1.421413741, -1.453152027, 1.061405429
    ax = jnp.abs(x)
    t = 1.0 / (1.0 + p * ax)
    poly = ((((a5 * t + a4) * t + a3) * t + a2) * t + a1) * t
    y = 1.0 - poly * jnp.exp(-ax * ax)
    return jnp.where(x >= 0.0, y, -y)


def _gelu(x):
    return 0.5 * x * (1.0 + _erf(x * (1.0 / math.sqrt(2.0))))


def _layernorm(x, g, b, eps):
    mean = jnp.mean(x, axis=-1, keepdims=True)
    var = jnp.mean(jnp.square(x - mean), axis=-1, keepdims=True)
    return (x - mean) * jax.lax.rsqrt(var + eps) * g + b


# ----------------------------------------------------------------------------
# Fused BERT kernel: embedding LN -> L encoder layers -> pooler -> classifiers
# ----------------------------------------------------------------------------
def _bert_fused_kernel(emb_ref, mask_ref, eg_ref, eb_ref,
                       qkv_w_ref, qkv_b_ref, ao_w_ref, ao_b_ref,
                       ln1_g_ref, ln1_b_ref, i_w_ref, i_b_ref,
                       o_w_ref, o_b_ref, ln2_g_ref, ln2_b_ref,
                       pool_w_ref, pool_b_ref, cls_w_ref, cls_b_ref,
                       logits_ref, *, B, S, H, nH, L, eps):
    dH = H // nH
    scale = 1.0 / math.sqrt(dH)
    f32 = jnp.float32

    mask = mask_ref[...]                                     # [B, S] additive (0 / -1e4)
    # Embedding LayerNorm (no fake zero residual).
    x = _layernorm(emb_ref[...], eg_ref[...], eb_ref[...], eps)   # [B*S, H]

    for l in range(L):           # static unroll: all layer weights already in VMEM
        # ---- fused Q/K/V projection: one MXU matmul, lane width 3H ----
        qkv = jnp.dot(x, qkv_w_ref[l], preferred_element_type=f32) + qkv_b_ref[l]

        # ---- multi-head attention, fully in VMEM (no split-heads HBM round trips) ----
        ctx_rows = []
        for b in range(B):
            mb = mask[b:b + 1, :]                            # [1, S] -> bcast over queries
            r0 = b * S
            heads = []
            for h in range(nH):
                q = qkv[r0:r0 + S, h * dH:(h + 1) * dH]                   # [S, dH]
                k = qkv[r0:r0 + S, H + h * dH:H + (h + 1) * dH]           # [S, dH]
                v = qkv[r0:r0 + S, 2 * H + h * dH:2 * H + (h + 1) * dH]   # [S, dH]
                # q @ k^T via dot_general (no explicit transpose needed)
                s = jax.lax.dot_general(q, k, (((1,), (1,)), ((), ())),
                                        preferred_element_type=f32) * scale + mb
                m = jnp.max(s, axis=-1, keepdims=True)
                p = jnp.exp(s - m)
                denom = jnp.sum(p, axis=-1, keepdims=True)
                o = jnp.dot(p, v, preferred_element_type=f32)             # [S, dH]
                # softmax normalization on the PV output via EUP reciprocal
                heads.append(o * pl.reciprocal(denom, approx=True))
            ctx_rows.append(jnp.concatenate(heads, axis=-1))              # [S, H]
        ctx = jnp.concatenate(ctx_rows, axis=0)                           # [B*S, H]

        # ---- attention output projection fused with residual + LayerNorm ----
        attn_out = jnp.dot(ctx, ao_w_ref[l], preferred_element_type=f32) + ao_b_ref[l]
        x = _layernorm(attn_out + x, ln1_g_ref[l], ln1_b_ref[l], eps)

        # ---- FFN (exact GELU) fused with residual + LayerNorm ----
        inter = _gelu(jnp.dot(x, i_w_ref[l], preferred_element_type=f32) + i_b_ref[l])
        ffn_out = jnp.dot(inter, o_w_ref[l], preferred_element_type=f32) + o_b_ref[l]
        x = _layernorm(ffn_out + x, ln2_g_ref[l], ln2_b_ref[l], eps)

    # ---- pooler (tanh on [CLS]) + all 3 classifier heads (concatenated, lane-padded) ----
    cls = jnp.concatenate([x[b * S:b * S + 1, :] for b in range(B)], axis=0)   # [B, H]
    pooled = jnp.tanh(jnp.dot(cls, pool_w_ref[...], preferred_element_type=f32)
                      + pool_b_ref[...])
    # dropout(p=0.3) is an identity in eval/inference mode (deterministic run).
    logits = jnp.dot(pooled, cls_w_ref[...], preferred_element_type=f32) + cls_b_ref[...]
    logits_ref[...] = logits.astype(logits_ref.dtype)                         # [B, 128]


# ----------------------------------------------------------------------------
# Forward pass (embedding gathers + loss are trivially small XLA glue)
# ----------------------------------------------------------------------------
def _cross_entropy(logits, labels):
    logp = jax.nn.log_softmax(logits, axis=-1)
    nll = -jnp.take_along_axis(logp, labels[:, None], axis=-1)[:, 0]
    return jnp.mean(nll)


def multi_output_bert_forward(params, input_ids, attention_mask,
                              labels_type=None, labels_emotion=None, labels_emoji=None,
                              *, cfg):
    B, S = input_ids.shape
    H, nH, L = cfg["hidden"], cfg["num_heads"], cfg["layers"]

    # embeddings: gathers stay in XLA; everything downstream is one Pallas kernel
    pos_ids = jnp.arange(S)
    emb = (jnp.take(params["word_emb"], input_ids, axis=0)
           + params["pos_emb"][pos_ids][None, :, :]
           + params["type_emb"][0][None, None, :])          # token_type_ids = 0
    emb2d = emb.reshape(B * S, H)
    ext_mask = (1.0 - attention_mask.astype(jnp.float32)) * -10000.0   # [B, S]

    logits_all = pl.pallas_call(
        functools.partial(_bert_fused_kernel, B=B, S=S, H=H, nH=nH, L=L, eps=1e-12),
        in_specs=[VMEM_SPEC] * 20,
        out_specs=VMEM_SPEC,
        out_shape=jax.ShapeDtypeStruct((B, LANE), jnp.float32),
    )(emb2d, ext_mask,
      params["emb_ln_g"], params["emb_ln_b"],
      params["qkv_w"], params["qkv_b"], params["ao_w"], params["ao_b"],
      params["ln1_g"], params["ln1_b"], params["i_w"], params["i_b"],
      params["o_w"], params["o_b"], params["ln2_g"], params["ln2_b"],
      params["pool_w"], params["pool_b"], params["cls_w"], params["cls_b"])

    nt = cfg["num_labels_type"]
    ne = cfg["num_labels_emotion"]
    nj = cfg["num_labels_emoji"]
    logits_type = logits_all[:, :nt]
    logits_emotion = logits_all[:, nt:nt + ne]
    logits_emoji = logits_all[:, nt + ne:nt + ne + nj]

    if (labels_type is not None and labels_emotion is not None
            and labels_emoji is not None):
        loss = (_cross_entropy(logits_type, labels_type)
                + _cross_entropy(logits_emotion, labels_emotion)
                + _cross_entropy(logits_emoji, labels_emoji))
        return loss, logits_type, logits_emotion, logits_emoji
    return logits_type, logits_emotion, logits_emoji


# ----------------------------------------------------------------------------
# Deterministic parameter construction (synthetic stand-in for from_pretrained),
# stored directly in the fused/stacked layout the kernel consumes.
# ----------------------------------------------------------------------------
def init_params(key, cfg):
    H, I, L = cfg["hidden"], cfg["intermediate"], cfg["layers"]
    nt, ne, nj = cfg["num_labels_type"], cfg["num_labels_emotion"], cfg["num_labels_emoji"]
    keys = iter(jax.random.split(key, 128))

    def nrm(shape):
        return jax.random.normal(next(keys), shape, jnp.float32) * 0.02

    def zeros(shape):
        return jnp.zeros(shape, jnp.float32)

    def ones(shape):
        return jnp.ones(shape, jnp.float32)

    qkv_w, qkv_b, ao_w, ao_b = [], [], [], []
    ln1_g, ln1_b, i_w, i_b = [], [], [], []
    o_w, o_b, ln2_g, ln2_b = [], [], [], []
    for _ in range(L):
        q_w, k_w, v_w = nrm((H, H)), nrm((H, H)), nrm((H, H))
        qkv_w.append(jnp.concatenate([q_w, k_w, v_w], axis=1))   # fused (H, 3H)
        qkv_b.append(zeros((1, 3 * H)))
        ao_w.append(nrm((H, H))); ao_b.append(zeros((1, H)))
        ln1_g.append(ones((1, H))); ln1_b.append(zeros((1, H)))
        i_w.append(nrm((H, I))); i_b.append(zeros((1, I)))
        o_w.append(nrm((I, H))); o_b.append(zeros((1, H)))
        ln2_g.append(ones((1, H))); ln2_b.append(zeros((1, H)))

    # three classifier heads concatenated along output dim, zero-padded to 128 lanes
    n_cls = nt + ne + nj
    cls_w = jnp.concatenate([nrm((H, nt)), nrm((H, ne)), nrm((H, nj))], axis=1)
    cls_w = jnp.pad(cls_w, ((0, 0), (0, LANE - n_cls)))
    cls_b = jnp.zeros((1, LANE), jnp.float32)

    return {
        "word_emb": nrm((cfg["vocab"], H)),
        "pos_emb": nrm((cfg["max_pos"], H)),
        "type_emb": nrm((cfg["type_vocab"], H)),
        "emb_ln_g": ones((1, H)),
        "emb_ln_b": zeros((1, H)),
        "qkv_w": jnp.stack(qkv_w), "qkv_b": jnp.stack(qkv_b),
        "ao_w": jnp.stack(ao_w), "ao_b": jnp.stack(ao_b),
        "ln1_g": jnp.stack(ln1_g), "ln1_b": jnp.stack(ln1_b),
        "i_w": jnp.stack(i_w), "i_b": jnp.stack(i_b),
        "o_w": jnp.stack(o_w), "o_b": jnp.stack(o_b),
        "ln2_g": jnp.stack(ln2_g), "ln2_b": jnp.stack(ln2_b),
        "pool_w": nrm((H, H)), "pool_b": zeros((1, H)),
        "cls_w": cls_w, "cls_b": cls_b,
    }


if __name__ == "__main__":
    cfg = dict(
        vocab=100, hidden=32, layers=2, num_heads=2, intermediate=64,
        max_pos=16, type_vocab=2,
        num_labels_type=3, num_labels_emotion=6, num_labels_emoji=10,
    )
    B, S = 2, 8

    root = jax.random.PRNGKey(0)
    k_param, k_ids, k_lt, k_le, k_lj = jax.random.split(root, 5)
    params = init_params(k_param, cfg)

    input_ids = jax.random.randint(k_ids, (B, S), 0, cfg["vocab"], dtype=jnp.int32)
    attention_mask = jnp.ones((B, S), jnp.int32).at[1, 6:].set(0)
    labels_type = jax.random.randint(k_lt, (B,), 0, cfg["num_labels_type"], dtype=jnp.int32)
    labels_emotion = jax.random.randint(k_le, (B,), 0, cfg["num_labels_emotion"], dtype=jnp.int32)
    labels_emoji = jax.random.randint(k_lj, (B,), 0, cfg["num_labels_emoji"], dtype=jnp.int32)

    fwd = jax.jit(functools.partial(multi_output_bert_forward, cfg=cfg))
    loss, lt, le, lj = fwd(params, input_ids, attention_mask,
                           labels_type, labels_emotion, labels_emoji)
    jax.block_until_ready((loss, lt, le, lj))

    assert lt.shape == (B, cfg["num_labels_type"])
    assert le.shape == (B, cfg["num_labels_emotion"])
    assert lj.shape == (B, cfg["num_labels_emoji"])
    assert loss.shape == ()
    assert bool(jnp.isfinite(loss))
    print("KERNEL_OK")
</pallas_src>

<mosaic_0001>
module attributes {stable_mosaic.version = 11 : i64} {
  func.func @_bert_fused_kernel(%arg0: memref<16x32xf32, #tpu.memory_space<vmem>>, %arg1: memref<2x8xf32, #tpu.memory_space<vmem>>, %arg2: memref<1x32xf32, #tpu.memory_space<vmem>>, %arg3: memref<1x32xf32, #tpu.memory_space<vmem>>, %arg4: memref<2x32x96xf32, #tpu.memory_space<vmem>>, %arg5: memref<2x1x96xf32, #tpu.memory_space<vmem>>, %arg6: memref<2x32x32xf32, #tpu.memory_space<vmem>>, %arg7: memref<2x1x32xf32, #tpu.memory_space<vmem>>, %arg8: memref<2x1x32xf32, #tpu.memory_space<vmem>>, %arg9: memref<2x1x32xf32, #tpu.memory_space<vmem>>, %arg10: memref<2x32x64xf32, #tpu.memory_space<vmem>>, %arg11: memref<2x1x64xf32, #tpu.memory_space<vmem>>, %arg12: memref<2x64x32xf32, #tpu.memory_space<vmem>>, %arg13: memref<2x1x32xf32, #tpu.memory_space<vmem>>, %arg14: memref<2x1x32xf32, #tpu.memory_space<vmem>>, %arg15: memref<2x1x32xf32, #tpu.memory_space<vmem>>, %arg16: memref<32x32xf32, #tpu.memory_space<vmem>>, %arg17: memref<1x32xf32, #tpu.memory_space<vmem>>, %arg18: memref<32x128xf32, #tpu.memory_space<vmem>>, %arg19: memref<1x128xf32, #tpu.memory_space<vmem>>, %arg20: memref<2x128xf32, #tpu.memory_space<vmem>>) attributes {dimension_semantics = [], scalar_prefetch = 0 : i64, scratch_operands = 0 : i64, tpu.core_type = #tpu.core_type<tc>} {
    %c0 = arith.constant 0 : index
    %c0_0 = arith.constant 0 : index
    %0 = vector.load %arg1[%c0, %c0_0] : memref<2x8xf32, #tpu.memory_space<vmem>>, vector<2x8xf32>
    %c0_1 = arith.constant 0 : index
    %c0_2 = arith.constant 0 : index
    %1 = vector.load %arg0[%c0_1, %c0_2] : memref<16x32xf32, #tpu.memory_space<vmem>>, vector<16x32xf32>
    %c0_3 = arith.constant 0 : index
    %c0_4 = arith.constant 0 : index
    %2 = vector.load %arg2[%c0_3, %c0_4] : memref<1x32xf32, #tpu.memory_space<vmem>>, vector<1x32xf32>
    %c0_5 = arith.constant 0 : index
    %c0_6 = arith.constant 0 : index
    %3 = vector.load %arg3[%c0_5, %c0_6] : memref<1x32xf32, #tpu.memory_space<vmem>>, vector<1x32xf32>
    %cst = arith.constant dense<0.000000e+00> : vector<16xf32>
    %4 = vector.multi_reduction <add>, %1, %cst [1] : vector<16x32xf32> to vector<16xf32>
    %5 = vector.shape_cast %4 : vector<16xf32> to vector<16x1xf32>
    %cst_7 = arith.constant 3.200000e+01 : f32
    %6 = vector.broadcast %cst_7 : f32 to vector<16x1xf32>
    %7 = arith.divf %5, %6 : vector<16x1xf32>
    %8 = vector.broadcast %7 : vector<16x1xf32> to vector<16x32xf32>
    %9 = arith.subf %1, %8 : vector<16x32xf32>
    %10 = arith.mulf %9, %9 : vector<16x32xf32>
    %cst_8 = arith.constant dense<0.000000e+00> : vector<16xf32>
    %11 = vector.multi_reduction <add>, %10, %cst_8 [1] : vector<16x32xf32> to vector<16xf32>
    %12 = vector.shape_cast %11 : vector<16xf32> to vector<16x1xf32>
    %cst_9 = arith.constant 3.200000e+01 : f32
    %13 = vector.broadcast %cst_9 : f32 to vector<16x1xf32>
    %14 = arith.divf %12, %13 : vector<16x1xf32>
    %15 = vector.broadcast %7 : vector<16x1xf32> to vector<16x32xf32>
    %16 = arith.subf %1, %15 : vector<16x32xf32>
    %cst_10 = arith.constant 9.99999996E-13 : f32
    %17 = vector.broadcast %cst_10 : f32 to vector<16x1xf32>
    %18 = arith.addf %14, %17 : vector<16x1xf32>
    %19 = math.rsqrt %18 : vector<16x1xf32>
    %20 = vector.broadcast %19 : vector<16x1xf32> to vector<16x32xf32>
    %21 = arith.mulf %16, %20 : vector<16x32xf32>
    %22 = vector.broadcast %2 : vector<1x32xf32> to vector<16x32xf32>
    %23 = arith.mulf %21, %22 : vector<16x32xf32>
    %24 = vector.broadcast %3 : vector<1x32xf32> to vector<16x32xf32>
    %25 = arith.addf %23, %24 : vector<16x32xf32>
    %c0_11 = arith.constant 0 : index
    %c0_12 = arith.constant 0 : index
    %c0_13 = arith.constant 0 : index
    %26 = vector.load %arg4[%c0_11, %c0_12, %c0_13] : memref<2x32x96xf32, #tpu.memory_space<vmem>>, vector<1x32x96xf32>
    %27 = vector.shape_cast %26 : vector<1x32x96xf32> to vector<32x96xf32>
    %cst_14 = arith.constant dense<0.000000e+00> : vector<16x96xf32>
    %28 = tpu.matmul %25, %27, %cst_14 {dimension_numbers = #tpu.dot_dimension_numbers<[1], [0], [0], [1], [0, 0, 1, 1], [], []>} : vector<16x32xf32>, vector<32x96xf32>, vector<16x96xf32> -> vector<16x96xf32>
    %c0_15 = arith.constant 0 : index
    %c0_16 = arith.constant 0 : index
    %c0_17 = arith.constant 0 : index
    %29 = vector.load %arg5[%c0_15, %c0_16, %c0_17] : memref<2x1x96xf32, #tpu.memory_space<vmem>>, vector<1x1x96xf32>
    %30 = vector.shape_cast %29 : vector<1x1x96xf32> to vector<1x96xf32>
    %31 = vector.broadcast %30 : vector<1x96xf32> to vector<16x96xf32>
    %32 = arith.addf %28, %31 : vector<16x96xf32>
    %33 = vector.extract_strided_slice %0 {offsets = [0, 0], sizes = [1, 8], strides = [1, 1]} : vector<2x8xf32> to vector<1x8xf32>
    %34 = vector.extract_strided_slice %32 {offsets = [0, 0], sizes = [8, 16], strides = [1, 1]} : vector<16x96xf32> to vector<8x16xf32>
    %35 = vector.extract_strided_slice %32 {offsets = [0, 32], sizes = [8, 16], strides = [1, 1]} : vector<16x96xf32> to vector<8x16xf32>
    %36 = vector.extract_strided_slice %32 {offsets = [0, 64], sizes = [8, 16], strides = [1, 1]} : vector<16x96xf32> to vector<8x16xf32>
    %cst_18 = arith.constant dense<0.000000e+00> : vector<8x8xf32>
    %37 = tpu.matmul %34, %35, %cst_18 {dimension_numbers = #tpu.dot_dimension_numbers<[1], [1], [0], [0], [0, 0, 1, 0], [], []>} : vector<8x16xf32>, vector<8x16xf32>, vector<8x8xf32> -> vector<8x8xf32>
    %cst_19 = arith.constant 2.500000e-01 : f32
    %38 = vector.broadcast %cst_19 : f32 to vector<8x8xf32>
    %39 = arith.mulf %37, %38 : vector<8x8xf32>
    %40 = vector.broadcast %33 : vector<1x8xf32> to vector<8x8xf32>
    %41 = arith.addf %39, %40 : vector<8x8xf32>
    %cst_20 = arith.constant dense<0xFF800000> : vector<8xf32>
    %42 = vector.multi_reduction <maximumf>, %41, %cst_20 [1] : vector<8x8xf32> to vector<8xf32>
    %43 = vector.shape_cast %42 : vector<8xf32> to vector<8x1xf32>
    %44 = vector.broadcast %43 : vector<8x1xf32> to vector<8x8xf32>
    %45 = arith.subf %41, %44 : vector<8x8xf32>
    %46 = math.exp %45 : vector<8x8xf32>
    %cst_21 = arith.constant dense<0.000000e+00> : vector<8xf32>
    %47 = vector.multi_reduction <add>, %46, %cst_21 [1] : vector<8x8xf32> to vector<8xf32>
    %48 = vector.shape_cast %47 : vector<8xf32> to vector<8x1xf32>
    %cst_22 = arith.constant dense<0.000000e+00> : vector<8x16xf32>
    %49 = tpu.matmul %46, %36, %cst_22 {dimension_numbers = #tpu.dot_dimension_numbers<[1], [0], [0], [1], [0, 0, 1, 1], [], []>} : vector<8x8xf32>, vector<8x16xf32>, vector<8x16xf32> -> vector<8x16xf32>
    %50 = tpu.reciprocal %48 {approx = true} : vector<8x1xf32> -> vector<8x1xf32>
    %51 = vector.broadcast %50 : vector<8x1xf32> to vector<8x16xf32>
    %52 = arith.mulf %49, %51 : vector<8x16xf32>
    %53 = vector.extract_strided_slice %32 {offsets = [0, 16], sizes = [8, 16], strides = [1, 1]} : vector<16x96xf32> to vector<8x16xf32>
    %54 = vector.extract_strided_slice %32 {offsets = [0, 48], sizes = [8, 16], strides = [1, 1]} : vector<16x96xf32> to vector<8x16xf32>
    %55 = vector.extract_strided_slice %32 {offsets = [0, 80], sizes = [8, 16], strides = [1, 1]} : vector<16x96xf32> to vector<8x16xf32>
    %cst_23 = arith.constant dense<0.000000e+00> : vector<8x8xf32>
    %56 = tpu.matmul %53, %54, %cst_23 {dimension_numbers = #tpu.dot_dimension_numbers<[1], [1], [0], [0], [0, 0, 1, 0], [], []>} : vector<8x16xf32>, vector<8x16xf32>, vector<8x8xf32> -> vector<8x8xf32>
    %cst_24 = arith.constant 2.500000e-01 : f32
    %57 = vector.broadcast %cst_24 : f32 to vector<8x8xf32>
    %58 = arith.mulf %56, %57 : vector<8x8xf32>
    %59 = vector.broadcast %33 : vector<1x8xf32> to vector<8x8xf32>
    %60 = arith.addf %58, %59 : vector<8x8xf32>
    %cst_25 = arith.constant dense<0xFF800000> : vector<8xf32>
    %61 = vector.multi_reduction <maximumf>, %60, %cst_25 [1] : vector<8x8xf32> to vector<8xf32>
    %62 = vector.shape_cast %61 : vector<8xf32> to vector<8x1xf32>
    %63 = vector.broadcast %62 : vector<8x1xf32> to vector<8x8xf32>
    %64 = arith.subf %60, %63 : vector<8x8xf32>
    %65 = math.exp %64 : vector<8x8xf32>
    %cst_26 = arith.constant dense<0.000000e+00> : vector<8xf32>
    %66 = vector.multi_reduction <add>, %65, %cst_26 [1] : vector<8x8xf32> to vector<8xf32>
    %67 = vector.shape_cast %66 : vector<8xf32> to vector<8x1xf32>
    %cst_27 = arith.constant dense<0.000000e+00> : vector<8x16xf32>
    %68 = tpu.matmul %65, %55, %cst_27 {dimension_numbers = #tpu.dot_dimension_numbers<[1], [0], [0], [1], [0, 0, 1, 1], [], []>} : vector<8x8xf32>, vector<8x16xf32>, vector<8x16xf32> -> vector<8x16xf32>
    %69 = tpu.reciprocal %67 {approx = true} : vector<8x1xf32> -> vector<8x1xf32>
    %70 = vector.broadcast %69 : vector<8x1xf32> to vector<8x16xf32>
    %71 = arith.mulf %68, %70 : vector<8x16xf32>
    %72 = tpu.concatenate %52, %71 in 1 : vector<8x16xf32>, vector<8x16xf32> -> vector<8x32xf32>
    %73 = vector.extract_strided_slice %0 {offsets = [1, 0], sizes = [1, 8], strides = [1, 1]} : vector<2x8xf32> to vector<1x8xf32>
    %74 = vector.extract_strided_slice %32 {offsets = [8, 0], sizes = [8, 16], strides = [1, 1]} : vector<16x96xf32> to vector<8x16xf32>
    %75 = vector.extract_strided_slice %32 {offsets = [8, 32], sizes = [8, 16], strides = [1, 1]} : vector<16x96xf32> to vector<8x16xf32>
    %76 = vector.extract_strided_slice %32 {offsets = [8, 64], sizes = [8, 16], strides = [1, 1]} : vector<16x96xf32> to vector<8x16xf32>
    %cst_28 = arith.constant dense<0.000000e+00> : vector<8x8xf32>
    %77 = tpu.matmul %74, %75, %cst_28 {dimension_numbers = #tpu.dot_dimension_numbers<[1], [1], [0], [0], [0, 0, 1, 0], [], []>} : vector<8x16xf32>, vector<8x16xf32>, vector<8x8xf32> -> vector<8x8xf32>
    %cst_29 = arith.constant 2.500000e-01 : f32
    %78 = vector.broadcast %cst_29 : f32 to vector<8x8xf32>
    %79 = arith.mulf %77, %78 : vector<8x8xf32>
    %80 = vector.broadcast %73 : vector<1x8xf32> to vector<8x8xf32>
    %81 = arith.addf %79, %80 : vector<8x8xf32>
    %cst_30 = arith.constant dense<0xFF800000> : vector<8xf32>
    %82 = vector.multi_reduction <maximumf>, %81, %cst_30 [1] : vector<8x8xf32> to vector<8xf32>
    %83 = vector.shape_cast %82 : vector<8xf32> to vector<8x1xf32>
    %84 = vector.broadcast %83 : vector<8x1xf32> to vector<8x8xf32>
    %85 = arith.subf %81, %84 : vector<8x8xf32>
    %86 = math.exp %85 : vector<8x8xf32>
    %cst_31 = arith.constant dense<0.000000e+00> : vector<8xf32>
    %87 = vector.multi_reduction <add>, %86, %cst_31 [1] : vector<8x8xf32> to vector<8xf32>
    %88 = vector.shape_cast %87 : vector<8xf32> to vector<8x1xf32>
    %cst_32 = arith.constant dense<0.000000e+00> : vector<8x16xf32>
    %89 = tpu.matmul %86, %76, %cst_32 {dimension_numbers = #tpu.dot_dimension_numbers<[1], [0], [0], [1], [0, 0, 1, 1], [], []>} : vector<8x8xf32>, vector<8x16xf32>, vector<8x16xf32> -> vector<8x16xf32>
    %90 = tpu.reciprocal %88 {approx = true} : vector<8x1xf32> -> vector<8x1xf32>
    %91 = vector.broadcast %90 : vector<8x1xf32> to vector<8x16xf32>
    %92 = arith.mulf %89, %91 : vector<8x16xf32>
    %93 = vector.extract_strided_slice %32 {offsets = [8, 16], sizes = [8, 16], strides = [1, 1]} : vector<16x96xf32> to vector<8x16xf32>
    %94 = vector.extract_strided_slice %32 {offsets = [8, 48], sizes = [8, 16], strides = [1, 1]} : vector<16x96xf32> to vector<8x16xf32>
    %95 = vector.extract_strided_slice %32 {offsets = [8, 80], sizes = [8, 16], strides = [1, 1]} : vector<16x96xf32> to vector<8x16xf32>
    %cst_33 = arith.constant dense<0.000000e+00> : vector<8x8xf32>
    %96 = tpu.matmul %93, %94, %cst_33 {dimension_numbers = #tpu.dot_dimension_numbers<[1], [1], [0], [0], [0, 0, 1, 0], [], []>} : vector<8x16xf32>, vector<8x16xf32>, vector<8x8xf32> -> vector<8x8xf32>
    %cst_34 = arith.constant 2.500000e-01 : f32
    %97 = vector.broadcast %cst_34 : f32 to vector<8x8xf32>
    %98 = arith.mulf %96, %97 : vector<8x8xf32>
    %99 = vector.broadcast %73 : vector<1x8xf32> to vector<8x8xf32>
    %100 = arith.addf %98, %99 : vector<8x8xf32>
    %cst_35 = arith.constant dense<0xFF800000> : vector<8xf32>
    %101 = vector.multi_reduction <maximumf>, %100, %cst_35 [1] : vector<8x8xf32> to vector<8xf32>
    %102 = vector.shape_cast %101 : vector<8xf32> to vector<8x1xf32>
    %103 = vector.broadcast %102 : vector<8x1xf32> to vector<8x8xf32>
    %104 = arith.subf %100, %103 : vector<8x8xf32>
    %105 = math.exp %104 : vector<8x8xf32>
    %cst_36 = arith.constant dense<0.000000e+00> : vector<8xf32>
    %106 = vector.multi_reduction <add>, %105, %cst_36 [1] : vector<8x8xf32> to vector<8xf32>
    %107 = vector.shape_cast %106 : vector<8xf32> to vector<8x1xf32>
    %cst_37 = arith.constant dense<0.000000e+00> : vector<8x16xf32>
    %108 = tpu.matmul %105, %95, %cst_37 {dimension_numbers = #tpu.dot_dimension_numbers<[1], [0], [0], [1], [0, 0, 1, 1], [], []>} : vector<8x8xf32>, vector<8x16xf32>, vector<8x16xf32> -> vector<8x16xf32>
    %109 = tpu.reciprocal %107 {approx = true} : vector<8x1xf32> -> vector<8x1xf32>
    %110 = vector.broadcast %109 : vector<8x1xf32> to vector<8x16xf32>
    %111 = arith.mulf %108, %110 : vector<8x16xf32>
    %112 = tpu.concatenate %92, %111 in 1 : vector<8x16xf32>, vector<8x16xf32> -> vector<8x32xf32>
    %113 = tpu.concatenate %72, %112 in 0 : vector<8x32xf32>, vector<8x32xf32> -> vector<16x32xf32>
    %c0_38 = arith.constant 0 : index
    %c0_39 = arith.constant 0 : index
    %c0_40 = arith.constant 0 : index
    %114 = vector.load %arg6[%c0_38, %c0_39, %c0_40] : memref<2x32x32xf32, #tpu.memory_space<vmem>>, vector<1x32x32xf32>
    %115 = vector.shape_cast %114 : vector<1x32x32xf32> to vector<32x32xf32>
    %cst_41 = arith.constant dense<0.000000e+00> : vector<16x32xf32>
    %116 = tpu.matmul %113, %115, %cst_41 {dimension_numbers = #tpu.dot_dimension_numbers<[1], [0], [0], [1], [0, 0, 1, 1], [], []>} : vector<16x32xf32>, vector<32x32xf32>, vector<16x32xf32> -> vector<16x32xf32>
    %c0_42 = arith.constant 0 : index
    %c0_43 = arith.constant 0 : index
    %c0_44 = arith.constant 0 : index
    %117 = vector.load %arg7[%c0_42, %c0_43, %c0_44] : memref<2x1x32xf32, #tpu.memory_space<vmem>>, vector<1x1x32xf32>
    %118 = vector.shape_cast %117 : vector<1x1x32xf32> to vector<1x32xf32>
    %119 = vector.broadcast %118 : vector<1x32xf32> to vector<16x32xf32>
    %120 = arith.addf %116, %119 : vector<16x32xf32>
    %121 = arith.addf %120, %25 : vector<16x32xf32>
    %c0_45 = arith.constant 0 : index
    %c0_46 = arith.constant 0 : index
    %c0_47 = arith.constant 0 : index
    %122 = vector.load %arg8[%c0_45, %c0_46, %c0_47] : memref<2x1x32xf32, #tpu.memory_space<vmem>>, vector<1x1x32xf32>
    %123 = vector.shape_cast %122 : vector<1x1x32xf32> to vector<1x32xf32>
    %c0_48 = arith.constant 0 : index
    %c0_49 = arith.constant 0 : index
    %c0_50 = arith.constant 0 : index
    %124 = vector.load %arg9[%c0_48, %c0_49, %c0_50] : memref<2x1x32xf32, #tpu.memory_space<vmem>>, vector<1x1x32xf32>
    %125 = vector.shape_cast %124 : vector<1x1x32xf32> to vector<1x32xf32>
    %cst_51 = arith.constant dense<0.000000e+00> : vector<16xf32>
    %126 = vector.multi_reduction <add>, %121, %cst_51 [1] : vector<16x32xf32> to vector<16xf32>
    %127 = vector.shape_cast %126 : vector<16xf32> to vector<16x1xf32>
    %cst_52 = arith.constant 3.200000e+01 : f32
    %128 = vector.broadcast %cst_52 : f32 to vector<16x1xf32>
    %129 = arith.divf %127, %128 : vector<16x1xf32>
    %130 = vector.broadcast %129 : vector<16x1xf32> to vector<16x32xf32>
    %131 = arith.subf %121, %130 : vector<16x32xf32>
    %132 = arith.mulf %131, %131 : vector<16x32xf32>
    %cst_53 = arith.constant dense<0.000000e+00> : vector<16xf32>
    %133 = vector.multi_reduction <add>, %132, %cst_53 [1] : vector<16x32xf32> to vector<16xf32>
    %134 = vector.shape_cast %133 : vector<16xf32> to vector<16x1xf32>
    %cst_54 = arith.constant 3.200000e+01 : f32
    %135 = vector.broadcast %cst_54 : f32 to vector<16x1xf32>
    %136 = arith.divf %134, %135 : vector<16x1xf32>
    %137 = vector.broadcast %129 : vector<16x1xf32> to vector<16x32xf32>
    %138 = arith.subf %121, %137 : vector<16x32xf32>
    %cst_55 = arith.constant 9.99999996E-13 : f32
    %139 = vector.broadcast %cst_55 : f32 to vector<16x1xf32>
    %140 = arith.addf %136, %139 : vector<16x1xf32>
    %141 = math.rsqrt %140 : vector<16x1xf32>
    %142 = vector.broadcast %141 : vector<16x1xf32> to vector<16x32xf32>
    %143 = arith.mulf %138, %142 : vector<16x32xf32>
    %144 = vector.broadcast %123 : vector<1x32xf32> to vector<16x32xf32>
    %145 = arith.mulf %143, %144 : vector<16x32xf32>
    %146 = vector.broadcast %125 : vector<1x32xf32> to vector<16x32xf32>
    %147 = arith.addf %145, %146 : vector<16x32xf32>
    %c0_56 = arith.constant 0 : index
    %c0_57 = arith.constant 0 : index
    %c0_58 = arith.constant 0 : index
    %148 = vector.load %arg10[%c0_56, %c0_57, %c0_58] : memref<2x32x64xf32, #tpu.memory_space<vmem>>, vector<1x32x64xf32>
    %149 = vector.shape_cast %148 : vector<1x32x64xf32> to vector<32x64xf32>
    %cst_59 = arith.constant dense<0.000000e+00> : vector<16x64xf32>
    %150 = tpu.matmul %147, %149, %cst_59 {dimension_numbers = #tpu.dot_dimension_numbers<[1], [0], [0], [1], [0, 0, 1, 1], [], []>} : vector<16x32xf32>, vector<32x64xf32>, vector<16x64xf32> -> vector<16x64xf32>
    %c0_60 = arith.constant 0 : index
    %c0_61 = arith.constant 0 : index
    %c0_62 = arith.constant 0 : index
    %151 = vector.load %arg11[%c0_60, %c0_61, %c0_62] : memref<2x1x64xf32, #tpu.memory_space<vmem>>, vector<1x1x64xf32>
    %152 = vector.shape_cast %151 : vector<1x1x64xf32> to vector<1x64xf32>
    %153 = vector.broadcast %152 : vector<1x64xf32> to vector<16x64xf32>
    %154 = arith.addf %150, %153 : vector<16x64xf32>
    %cst_63 = arith.constant 5.000000e-01 : f32
    %155 = vector.broadcast %cst_63 : f32 to vector<16x64xf32>
    %156 = arith.mulf %155, %154 : vector<16x64xf32>
    %cst_64 = arith.constant 0.707106769 : f32
    %157 = vector.broadcast %cst_64 : f32 to vector<16x64xf32>
    %158 = arith.mulf %154, %157 : vector<16x64xf32>
    %159 = math.absf %158 : vector<16x64xf32>
    %cst_65 = arith.constant 0.327591091 : f32
    %160 = vector.broadcast %cst_65 : f32 to vector<16x64xf32>
    %161 = arith.mulf %160, %159 : vector<16x64xf32>
    %cst_66 = arith.constant 1.000000e+00 : f32
    %162 = vector.broadcast %cst_66 : f32 to vector<16x64xf32>
    %163 = arith.addf %162, %161 : vector<16x64xf32>
    %cst_67 = arith.constant 1.000000e+00 : f32
    %164 = vector.broadcast %cst_67 : f32 to vector<16x64xf32>
    %165 = arith.divf %164, %163 : vector<16x64xf32>
    %cst_68 = arith.constant 1.06140542 : f32
    %166 = vector.broadcast %cst_68 : f32 to vector<16x64xf32>
    %167 = arith.mulf %166, %165 : vector<16x64xf32>
    %cst_69 = arith.constant -1.45315206 : f32
    %168 = vector.broadcast %cst_69 : f32 to vector<16x64xf32>
    %169 = arith.addf %167, %168 : vector<16x64xf32>
    %170 = arith.mulf %169, %165 : vector<16x64xf32>
    %cst_70 = arith.constant 1.42141378 : f32
    %171 = vector.broadcast %cst_70 : f32 to vector<16x64xf32>
    %172 = arith.addf %170, %171 : vector<16x64xf32>
    %173 = arith.mulf %172, %165 : vector<16x64xf32>
    %cst_71 = arith.constant -0.284496725 : f32
    %174 = vector.broadcast %cst_71 : f32 to vector<16x64xf32>
    %175 = arith.addf %173, %174 : vector<16x64xf32>
    %176 = arith.mulf %175, %165 : vector<16x64xf32>
    %cst_72 = arith.constant 0.254829586 : f32
    %177 = vector.broadcast %cst_72 : f32 to vector<16x64xf32>
    %178 = arith.addf %176, %177 : vector<16x64xf32>
    %179 = arith.mulf %178, %165 : vector<16x64xf32>
    %cst_73 = arith.constant 0.000000e+00 : f32
    %180 = vector.broadcast %cst_73 : f32 to vector<16x64xf32>
    %181 = arith.subf %180, %159 : vector<16x64xf32>
    %182 = arith.mulf %181, %159 : vector<16x64xf32>
    %183 = math.exp %182 : vector<16x64xf32>
    %184 = arith.mulf %179, %183 : vector<16x64xf32>
    %cst_74 = arith.constant 1.000000e+00 : f32
    %185 = vector.broadcast %cst_74 : f32 to vector<16x64xf32>
    %186 = arith.subf %185, %184 : vector<16x64xf32>
    %cst_75 = arith.constant 0.000000e+00 : f32
    %187 = vector.broadcast %cst_75 : f32 to vector<16x64xf32>
    %188 = arith.cmpf oge, %158, %187 : vector<16x64xf32>
    %cst_76 = arith.constant 0.000000e+00 : f32
    %189 = vector.broadcast %cst_76 : f32 to vector<16x64xf32>
    %190 = arith.subf %189, %186 : vector<16x64xf32>
    %191 = arith.select %188, %186, %190 : vector<16x64xi1>, vector<16x64xf32>
    %cst_77 = arith.constant 1.000000e+00 : f32
    %192 = vector.broadcast %cst_77 : f32 to vector<16x64xf32>
    %193 = arith.addf %192, %191 : vector<16x64xf32>
    %194 = arith.mulf %156, %193 : vector<16x64xf32>
    %c0_78 = arith.constant 0 : index
    %c0_79 = arith.constant 0 : index
    %c0_80 = arith.constant 0 : index
    %195 = vector.load %arg12[%c0_78, %c0_79, %c0_80] : memref<2x64x32xf32, #tpu.memory_space<vmem>>, vector<1x64x32xf32>
    %196 = vector.shape_cast %195 : vector<1x64x32xf32> to vector<64x32xf32>
    %cst_81 = arith.constant dense<0.000000e+00> : vector<16x32xf32>
    %197 = tpu.matmul %194, %196, %cst_81 {dimension_numbers = #tpu.dot_dimension_numbers<[1], [0], [0], [1], [0, 0, 1, 1], [], []>} : vector<16x64xf32>, vector<64x32xf32>, vector<16x32xf32> -> vector<16x32xf32>
    %c0_82 = arith.constant 0 : index
    %c0_83 = arith.constant 0 : index
    %c0_84 = arith.constant 0 : index
    %198 = vector.load %arg13[%c0_82, %c0_83, %c0_84] : memref<2x1x32xf32, #tpu.memory_space<vmem>>, vector<1x1x32xf32>
    %199 = vector.shape_cast %198 : vector<1x1x32xf32> to vector<1x32xf32>
    %200 = vector.broadcast %199 : vector<1x32xf32> to vector<16x32xf32>
    %201 = arith.addf %197, %200 : vector<16x32xf32>
    %202 = arith.addf %201, %147 : vector<16x32xf32>
    %c0_85 = arith.constant 0 : index
    %c0_86 = arith.constant 0 : index
    %c0_87 = arith.constant 0 : index
    %203 = vector.load %arg14[%c0_85, %c0_86, %c0_87] : memref<2x1x32xf32, #tpu.memory_space<vmem>>, vector<1x1x32xf32>
    %204 = vector.shape_cast %203 : vector<1x1x32xf32> to vector<1x32xf32>
    %c0_88 = arith.constant 0 : index
    %c0_89 = arith.constant 0 : index
    %c0_90 = arith.constant 0 : index
    %205 = vector.load %arg15[%c0_88, %c0_89, %c0_90] : memref<2x1x32xf32, #tpu.memory_space<vmem>>, vector<1x1x32xf32>
    %206 = vector.shape_cast %205 : vector<1x1x32xf32> to vector<1x32xf32>
    %cst_91 = arith.constant dense<0.000000e+00> : vector<16xf32>
    %207 = vector.multi_reduction <add>, %202, %cst_91 [1] : vector<16x32xf32> to vector<16xf32>
    %208 = vector.shape_cast %207 : vector<16xf32> to vector<16x1xf32>
    %cst_92 = arith.constant 3.200000e+01 : f32
    %209 = vector.broadcast %cst_92 : f32 to vector<16x1xf32>
    %210 = arith.divf %208, %209 : vector<16x1xf32>
    %211 = vector.broadcast %210 : vector<16x1xf32> to vector<16x32xf32>
    %212 = arith.subf %202, %211 : vector<16x32xf32>
    %213 = arith.mulf %212, %212 : vector<16x32xf32>
    %cst_93 = arith.constant dense<0.000000e+00> : vector<16xf32>
    %214 = vector.multi_reduction <add>, %213, %cst_93 [1] : vector<16x32xf32> to vector<16xf32>
    %215 = vector.shape_cast %214 : vector<16xf32> to vector<16x1xf32>
    %cst_94 = arith.constant 3.200000e+01 : f32
    %216 = vector.broadcast %cst_94 : f32 to vector<16x1xf32>
    %217 = arith.divf %215, %216 : vector<16x1xf32>
    %218 = vector.broadcast %210 : vector<16x1xf32> to vector<16x32xf32>
    %219 = arith.subf %202, %218 : vector<16x32xf32>
    %cst_95 = arith.constant 9.99999996E-13 : f32
    %220 = vector.broadcast %cst_95 : f32 to vector<16x1xf32>
    %221 = arith.addf %217, %220 : vector<16x1xf32>
    %222 = math.rsqrt %221 : vector<16x1xf32>
    %223 = vector.broadcast %222 : vector<16x1xf32> to vector<16x32xf32>
    %224 = arith.mulf %219, %223 : vector<16x32xf32>
    %225 = vector.broadcast %204 : vector<1x32xf32> to vector<16x32xf32>
    %226 = arith.mulf %224, %225 : vector<16x32xf32>
    %227 = vector.broadcast %206 : vector<1x32xf32> to vector<16x32xf32>
    %228 = arith.addf %226, %227 : vector<16x32xf32>
    %c1 = arith.constant 1 : index
    %c0_96 = arith.constant 0 : index
    %c0_97 = arith.constant 0 : index
    %229 = vector.load %arg4[%c1, %c0_96, %c0_97] : memref<2x32x96xf32, #tpu.memory_space<vmem>>, vector<1x32x96xf32>
    %230 = vector.shape_cast %229 : vector<1x32x96xf32> to vector<32x96xf32>
    %cst_98 = arith.constant dense<0.000000e+00> : vector<16x96xf32>
    %231 = tpu.matmul %228, %230, %cst_98 {dimension_numbers = #tpu.dot_dimension_numbers<[1], [0], [0], [1], [0, 0, 1, 1], [], []>} : vector<16x32xf32>, vector<32x96xf32>, vector<16x96xf32> -> vector<16x96xf32>
    %c1_99 = arith.constant 1 : index
    %c0_100 = arith.constant 0 : index
    %c0_101 = arith.constant 0 : index
    %232 = vector.load %arg5[%c1_99, %c0_100, %c0_101] : memref<2x1x96xf32, #tpu.memory_space<vmem>>, vector<1x1x96xf32>
    %233 = vector.shape_cast %232 : vector<1x1x96xf32> to vector<1x96xf32>
    %234 = vector.broadcast %233 : vector<1x96xf32> to vector<16x96xf32>
    %235 = arith.addf %231, %234 : vector<16x96xf32>
    %236 = vector.extract_strided_slice %0 {offsets = [0, 0], sizes = [1, 8], strides = [1, 1]} : vector<2x8xf32> to vector<1x8xf32>
    %237 = vector.extract_strided_slice %235 {offsets = [0, 0], sizes = [8, 16], strides = [1, 1]} : vector<16x96xf32> to vector<8x16xf32>
    %238 = vector.extract_strided_slice %235 {offsets = [0, 32], sizes = [8, 16], strides = [1, 1]} : vector<16x96xf32> to vector<8x16xf32>
    %239 = vector.extract_strided_slice %235 {offsets = [0, 64], sizes = [8, 16], strides = [1, 1]} : vector<16x96xf32> to vector<8x16xf32>
    %cst_102 = arith.constant dense<0.000000e+00> : vector<8x8xf32>
    %240 = tpu.matmul %237, %238, %cst_102 {dimension_numbers = #tpu.dot_dimension_numbers<[1], [1], [0], [0], [0, 0, 1, 0], [], []>} : vector<8x16xf32>, vector<8x16xf32>, vector<8x8xf32> -> vector<8x8xf32>
    %cst_103 = arith.constant 2.500000e-01 : f32
    %241 = vector.broadcast %cst_103 : f32 to vector<8x8xf32>
    %242 = arith.mulf %240, %241 : vector<8x8xf32>
    %243 = vector.broadcast %236 : vector<1x8xf32> to vector<8x8xf32>
    %244 = arith.addf %242, %243 : vector<8x8xf32>
    %cst_104 = arith.constant dense<0xFF800000> : vector<8xf32>
    %245 = vector.multi_reduction <maximumf>, %244, %cst_104 [1] : vector<8x8xf32> to vector<8xf32>
    %246 = vector.shape_cast %245 : vector<8xf32> to vector<8x1xf32>
    %247 = vector.broadcast %246 : vector<8x1xf32> to vector<8x8xf32>
    %248 = arith.subf %244, %247 : vector<8x8xf32>
    %249 = math.exp %248 : vector<8x8xf32>
    %cst_105 = arith.constant dense<0.000000e+00> : vector<8xf32>
    %250 = vector.multi_reduction <add>, %249, %cst_105 [1] : vector<8x8xf32> to vector<8xf32>
    %251 = vector.shape_cast %250 : vector<8xf32> to vector<8x1xf32>
    %cst_106 = arith.constant dense<0.000000e+00> : vector<8x16xf32>
    %252 = tpu.matmul %249, %239, %cst_106 {dimension_numbers = #tpu.dot_dimension_numbers<[1], [0], [0], [1], [0, 0, 1, 1], [], []>} : vector<8x8xf32>, vector<8x16xf32>, vector<8x16xf32> -> vector<8x16xf32>
    %253 = tpu.reciprocal %251 {approx = true} : vector<8x1xf32> -> vector<8x1xf32>
    %254 = vector.broadcast %253 : vector<8x1xf32> to vector<8x16xf32>
    %255 = arith.mulf %252, %254 : vector<8x16xf32>
    %256 = vector.extract_strided_slice %235 {offsets = [0, 16], sizes = [8, 16], strides = [1, 1]} : vector<16x96xf32> to vector<8x16xf32>
    %257 = vector.extract_strided_slice %235 {offsets = [0, 48], sizes = [8, 16], strides = [1, 1]} : vector<16x96xf32> to vector<8x16xf32>
    %258 = vector.extract_strided_slice %235 {offsets = [0, 80], sizes = [8, 16], strides = [1, 1]} : vector<16x96xf32> to vector<8x16xf32>
    %cst_107 = arith.constant dense<0.000000e+00> : vector<8x8xf32>
    %259 = tpu.matmul %256, %257, %cst_107 {dimension_numbers = #tpu.dot_dimension_numbers<[1], [1], [0], [0], [0, 0, 1, 0], [], []>} : vector<8x16xf32>, vector<8x16xf32>, vector<8x8xf32> -> vector<8x8xf32>
    %cst_108 = arith.constant 2.500000e-01 : f32
    %260 = vector.broadcast %cst_108 : f32 to vector<8x8xf32>
    %261 = arith.mulf %259, %260 : vector<8x8xf32>
    %262 = vector.broadcast %236 : vector<1x8xf32> to vector<8x8xf32>
    %263 = arith.addf %261, %262 : vector<8x8xf32>
    %cst_109 = arith.constant dense<0xFF800000> : vector<8xf32>
    %264 = vector.multi_reduction <maximumf>, %263, %cst_109 [1] : vector<8x8xf32> to vector<8xf32>
    %265 = vector.shape_cast %264 : vector<8xf32> to vector<8x1xf32>
    %266 = vector.broadcast %265 : vector<8x1xf32> to vector<8x8xf32>
    %267 = arith.subf %263, %266 : vector<8x8xf32>
    %268 = math.exp %267 : vector<8x8xf32>
    %cst_110 = arith.constant dense<0.000000e+00> : vector<8xf32>
    %269 = vector.multi_reduction <add>, %268, %cst_110 [1] : vector<8x8xf32> to vector<8xf32>
    %270 = vector.shape_cast %269 : vector<8xf32> to vector<8x1xf32>
    %cst_111 = arith.constant dense<0.000000e+00> : vector<8x16xf32>
    %271 = tpu.matmul %268, %258, %cst_111 {dimension_numbers = #tpu.dot_dimension_numbers<[1], [0], [0], [1], [0, 0, 1, 1], [], []>} : vector<8x8xf32>, vector<8x16xf32>, vector<8x16xf32> -> vector<8x16xf32>
    %272 = tpu.reciprocal %270 {approx = true} : vector<8x1xf32> -> vector<8x1xf32>
    %273 = vector.broadcast %272 : vector<8x1xf32> to vector<8x16xf32>
    %274 = arith.mulf %271, %273 : vector<8x16xf32>
    %275 = tpu.concatenate %255, %274 in 1 : vector<8x16xf32>, vector<8x16xf32> -> vector<8x32xf32>
    %276 = vector.extract_strided_slice %0 {offsets = [1, 0], sizes = [1, 8], strides = [1, 1]} : vector<2x8xf32> to vector<1x8xf32>
    %277 = vector.extract_strided_slice %235 {offsets = [8, 0], sizes = [8, 16], strides = [1, 1]} : vector<16x96xf32> to vector<8x16xf32>
    %278 = vector.extract_strided_slice %235 {offsets = [8, 32], sizes = [8, 16], strides = [1, 1]} : vector<16x96xf32> to vector<8x16xf32>
    %279 = vector.extract_strided_slice %235 {offsets = [8, 64], sizes = [8, 16], strides = [1, 1]} : vector<16x96xf32> to vector<8x16xf32>
    %cst_112 = arith.constant dense<0.000000e+00> : vector<8x8xf32>
    %280 = tpu.matmul %277, %278, %cst_112 {dimension_numbers = #tpu.dot_dimension_numbers<[1], [1], [0], [0], [0, 0, 1, 0], [], []>} : vector<8x16xf32>, vector<8x16xf32>, vector<8x8xf32> -> vector<8x8xf32>
    %cst_113 = arith.constant 2.500000e-01 : f32
    %281 = vector.broadcast %cst_113 : f32 to vector<8x8xf32>
    %282 = arith.mulf %280, %281 : vector<8x8xf32>
    %283 = vector.broadcast %276 : vector<1x8xf32> to vector<8x8xf32>
    %284 = arith.addf %282, %283 : vector<8x8xf32>
    %cst_114 = arith.constant dense<0xFF800000> : vector<8xf32>
    %285 = vector.multi_reduction <maximumf>, %284, %cst_114 [1] : vector<8x8xf32> to vector<8xf32>
    %286 = vector.shape_cast %285 : vector<8xf32> to vector<8x1xf32>
    %287 = vector.broadcast %286 : vector<8x1xf32> to vector<8x8xf32>
    %288 = arith.subf %284, %287 : vector<8x8xf32>
    %289 = math.exp %288 : vector<8x8xf32>
    %cst_115 = arith.constant dense<0.000000e+00> : vector<8xf32>
    %290 = vector.multi_reduction <add>, %289, %cst_115 [1] : vector<8x8xf32> to vector<8xf32>
    %291 = vector.shape_cast %290 : vector<8xf32> to vector<8x1xf32>
    %cst_116 = arith.constant dense<0.000000e+00> : vector<8x16xf32>
    %292 = tpu.matmul %289, %279, %cst_116 {dimension_numbers = #tpu.dot_dimension_numbers<[1], [0], [0], [1], [0, 0, 1, 1], [], []>} : vector<8x8xf32>, vector<8x16xf32>, vector<8x16xf32> -> vector<8x16xf32>
    %293 = tpu.reciprocal %291 {approx = true} : vector<8x1xf32> -> vector<8x1xf32>
    %294 = vector.broadcast %293 : vector<8x1xf32> to vector<8x16xf32>
    %295 = arith.mulf %292, %294 : vector<8x16xf32>
    %296 = vector.extract_strided_slice %235 {offsets = [8, 16], sizes = [8, 16], strides = [1, 1]} : vector<16x96xf32> to vector<8x16xf32>
    %297 = vector.extract_strided_slice %235 {offsets = [8, 48], sizes = [8, 16], strides = [1, 1]} : vector<16x96xf32> to vector<8x16xf32>
    %298 = vector.extract_strided_slice %235 {offsets = [8, 80], sizes = [8, 16], strides = [1, 1]} : vector<16x96xf32> to vector<8x16xf32>
    %cst_117 = arith.constant dense<0.000000e+00> : vector<8x8xf32>
    %299 = tpu.matmul %296, %297, %cst_117 {dimension_numbers = #tpu.dot_dimension_numbers<[1], [1], [0], [0], [0, 0, 1, 0], [], []>} : vector<8x16xf32>, vector<8x16xf32>, vector<8x8xf32> -> vector<8x8xf32>
    %cst_118 = arith.constant 2.500000e-01 : f32
    %300 = vector.broadcast %cst_118 : f32 to vector<8x8xf32>
    %301 = arith.mulf %299, %300 : vector<8x8xf32>
    %302 = vector.broadcast %276 : vector<1x8xf32> to vector<8x8xf32>
    %303 = arith.addf %301, %302 : vector<8x8xf32>
    %cst_119 = arith.constant dense<0xFF800000> : vector<8xf32>
    %304 = vector.multi_reduction <maximumf>, %303, %cst_119 [1] : vector<8x8xf32> to vector<8xf32>
    %305 = vector.shape_cast %304 : vector<8xf32> to vector<8x1xf32>
    %306 = vector.broadcast %305 : vector<8x1xf32> to vector<8x8xf32>
    %307 = arith.subf %303, %306 : vector<8x8xf32>
    %308 = math.exp %307 : vector<8x8xf32>
    %cst_120 = arith.constant dense<0.000000e+00> : vector<8xf32>
    %309 = vector.multi_reduction <add>, %308, %cst_120 [1] : vector<8x8xf32> to vector<8xf32>
    %310 = vector.shape_cast %309 : vector<8xf32> to vector<8x1xf32>
    %cst_121 = arith.constant dense<0.000000e+00> : vector<8x16xf32>
    %311 = tpu.matmul %308, %298, %cst_121 {dimension_numbers = #tpu.dot_dimension_numbers<[1], [0], [0], [1], [0, 0, 1, 1], [], []>} : vector<8x8xf32>, vector<8x16xf32>, vector<8x16xf32> -> vector<8x16xf32>
    %312 = tpu.reciprocal %310 {approx = true} : vector<8x1xf32> -> vector<8x1xf32>
    %313 = vector.broadcast %312 : vector<8x1xf32> to vector<8x16xf32>
    %314 = arith.mulf %311, %313 : vector<8x16xf32>
    %315 = tpu.concatenate %295, %314 in 1 : vector<8x16xf32>, vector<8x16xf32> -> vector<8x32xf32>
    %316 = tpu.concatenate %275, %315 in 0 : vector<8x32xf32>, vector<8x32xf32> -> vector<16x32xf32>
    %c1_122 = arith.constant 1 : index
    %c0_123 = arith.constant 0 : index
    %c0_124 = arith.constant 0 : index
    %317 = vector.load %arg6[%c1_122, %c0_123, %c0_124] : memref<2x32x32xf32, #tpu.memory_space<vmem>>, vector<1x32x32xf32>
    %318 = vector.shape_cast %317 : vector<1x32x32xf32> to vector<32x32xf32>
    %cst_125 = arith.constant dense<0.000000e+00> : vector<16x32xf32>
    %319 = tpu.matmul %316, %318, %cst_125 {dimension_numbers = #tpu.dot_dimension_numbers<[1], [0], [0], [1], [0, 0, 1, 1], [], []>} : vector<16x32xf32>, vector<32x32xf32>, vector<16x32xf32> -> vector<16x32xf32>
    %c1_126 = arith.constant 1 : index
    %c0_127 = arith.constant 0 : index
    %c0_128 = arith.constant 0 : index
    %320 = vector.load %arg7[%c1_126, %c0_127, %c0_128] : memref<2x1x32xf32, #tpu.memory_space<vmem>>, vector<1x1x32xf32>
    %321 = vector.shape_cast %320 : vector<1x1x32xf32> to vector<1x32xf32>
    %322 = vector.broadcast %321 : vector<1x32xf32> to vector<16x32xf32>
    %323 = arith.addf %319, %322 : vector<16x32xf32>
    %324 = arith.addf %323, %228 : vector<16x32xf32>
    %c1_129 = arith.constant 1 : index
    %c0_130 = arith.constant 0 : index
    %c0_131 = arith.constant 0 : index
    %325 = vector.load %arg8[%c1_129, %c0_130, %c0_131] : memref<2x1x32xf32, #tpu.memory_space<vmem>>, vector<1x1x32xf32>
    %326 = vector.shape_cast %325 : vector<1x1x32xf32> to vector<1x32xf32>
    %c1_132 = arith.constant 1 : index
    %c0_133 = arith.constant 0 : index
    %c0_134 = arith.constant 0 : index
    %327 = vector.load %arg9[%c1_132, %c0_133, %c0_134] : memref<2x1x32xf32, #tpu.memory_space<vmem>>, vector<1x1x32xf32>
    %328 = vector.shape_cast %327 : vector<1x1x32xf32> to vector<1x32xf32>
    %cst_135 = arith.constant dense<0.000000e+00> : vector<16xf32>
    %329 = vector.multi_reduction <add>, %324, %cst_135 [1] : vector<16x32xf32> to vector<16xf32>
    %330 = vector.shape_cast %329 : vector<16xf32> to vector<16x1xf32>
    %cst_136 = arith.constant 3.200000e+01 : f32
    %331 = vector.broadcast %cst_136 : f32 to vector<16x1xf32>
    %332 = arith.divf %330, %331 : vector<16x1xf32>
    %333 = vector.broadcast %332 : vector<16x1xf32> to vector<16x32xf32>
    %334 = arith.subf %324, %333 : vector<16x32xf32>
    %335 = arith.mulf %334, %334 : vector<16x32xf32>
    %cst_137 = arith.constant dense<0.000000e+00> : vector<16xf32>
    %336 = vector.multi_reduction <add>, %335, %cst_137 [1] : vector<16x32xf32> to vector<16xf32>
    %337 = vector.shape_cast %336 : vector<16xf32> to vector<16x1xf32>
    %cst_138 = arith.constant 3.200000e+01 : f32
    %338 = vector.broadcast %cst_138 : f32 to vector<16x1xf32>
    %339 = arith.divf %337, %338 : vector<16x1xf32>
    %340 = vector.broadcast %332 : vector<16x1xf32> to vector<16x32xf32>
    %341 = arith.subf %324, %340 : vector<16x32xf32>
    %cst_139 = arith.constant 9.99999996E-13 : f32
    %342 = vector.broadcast %cst_139 : f32 to vector<16x1xf32>
    %343 = arith.addf %339, %342 : vector<16x1xf32>
    %344 = math.rsqrt %343 : vector<16x1xf32>
    %345 = vector.broadcast %344 : vector<16x1xf32> to vector<16x32xf32>
    %346 = arith.mulf %341, %345 : vector<16x32xf32>
    %347 = vector.broadcast %326 : vector<1x32xf32> to vector<16x32xf32>
    %348 = arith.mulf %346, %347 : vector<16x32xf32>
    %349 = vector.broadcast %328 : vector<1x32xf32> to vector<16x32xf32>
    %350 = arith.addf %348, %349 : vector<16x32xf32>
    %c1_140 = arith.constant 1 : index
    %c0_141 = arith.constant 0 : index
    %c0_142 = arith.constant 0 : index
    %351 = vector.load %arg10[%c1_140, %c0_141, %c0_142] : memref<2x32x64xf32, #tpu.memory_space<vmem>>, vector<1x32x64xf32>
    %352 = vector.shape_cast %351 : vector<1x32x64xf32> to vector<32x64xf32>
    %cst_143 = arith.constant dense<0.000000e+00> : vector<16x64xf32>
    %353 = tpu.matmul %350, %352, %cst_143 {dimension_numbers = #tpu.dot_dimension_numbers<[1], [0], [0], [1], [0, 0, 1, 1], [], []>} : vector<16x32xf32>, vector<32x64xf32>, vector<16x64xf32> -> vector<16x64xf32>
    %c1_144 = arith.constant 1 : index
    %c0_145 = arith.constant 0 : index
    %c0_146 = arith.constant 0 : index
    %354 = vector.load %arg11[%c1_144, %c0_145, %c0_146] : memref<2x1x64xf32, #tpu.memory_space<vmem>>, vector<1x1x64xf32>
    %355 = vector.shape_cast %354 : vector<1x1x64xf32> to vector<1x64xf32>
    %356 = vector.broadcast %355 : vector<1x64xf32> to vector<16x64xf32>
    %357 = arith.addf %353, %356 : vector<16x64xf32>
    %cst_147 = arith.constant 5.000000e-01 : f32
    %358 = vector.broadcast %cst_147 : f32 to vector<16x64xf32>
    %359 = arith.mulf %358, %357 : vector<16x64xf32>
    %cst_148 = arith.constant 0.707106769 : f32
    %360 = vector.broadcast %cst_148 : f32 to vector<16x64xf32>
    %361 = arith.mulf %357, %360 : vector<16x64xf32>
    %362 = math.absf %361 : vector<16x64xf32>
    %cst_149 = arith.constant 0.327591091 : f32
    %363 = vector.broadcast %cst_149 : f32 to vector<16x64xf32>
    %364 = arith.mulf %363, %362 : vector<16x64xf32>
    %cst_150 = arith.constant 1.000000e+00 : f32
    %365 = vector.broadcast %cst_150 : f32 to vector<16x64xf32>
    %366 = arith.addf %365, %364 : vector<16x64xf32>
    %cst_151 = arith.constant 1.000000e+00 : f32
    %367 = vector.broadcast %cst_151 : f32 to vector<16x64xf32>
    %368 = arith.divf %367, %366 : vector<16x64xf32>
    %cst_152 = arith.constant 1.06140542 : f32
    %369 = vector.broadcast %cst_152 : f32 to vector<16x64xf32>
    %370 = arith.mulf %369, %368 : vector<16x64xf32>
    %cst_153 = arith.constant -1.45315206 : f32
    %371 = vector.broadcast %cst_153 : f32 to vector<16x64xf32>
    %372 = arith.addf %370, %371 : vector<16x64xf32>
    %373 = arith.mulf %372, %368 : vector<16x64xf32>
    %cst_154 = arith.constant 1.42141378 : f32
    %374 = vector.broadcast %cst_154 : f32 to vector<16x64xf32>
    %375 = arith.addf %373, %374 : vector<16x64xf32>
    %376 = arith.mulf %375, %368 : vector<16x64xf32>
    %cst_155 = arith.constant -0.284496725 : f32
    %377 = vector.broadcast %cst_155 : f32 to vector<16x64xf32>
    %378 = arith.addf %376, %377 : vector<16x64xf32>
    %379 = arith.mulf %378, %368 : vector<16x64xf32>
    %cst_156 = arith.constant 0.254829586 : f32
    %380 = vector.broadcast %cst_156 : f32 to vector<16x64xf32>
    %381 = arith.addf %379, %380 : vector<16x64xf32>
    %382 = arith.mulf %381, %368 : vector<16x64xf32>
    %cst_157 = arith.constant 0.000000e+00 : f32
    %383 = vector.broadcast %cst_157 : f32 to vector<16x64xf32>
    %384 = arith.subf %383, %362 : vector<16x64xf32>
    %385 = arith.mulf %384, %362 : vector<16x64xf32>
    %386 = math.exp %385 : vector<16x64xf32>
    %387 = arith.mulf %382, %386 : vector<16x64xf32>
    %cst_158 = arith.constant 1.000000e+00 : f32
    %388 = vector.broadcast %cst_158 : f32 to vector<16x64xf32>
    %389 = arith.subf %388, %387 : vector<16x64xf32>
    %cst_159 = arith.constant 0.000000e+00 : f32
    %390 = vector.broadcast %cst_159 : f32 to vector<16x64xf32>
    %391 = arith.cmpf oge, %361, %390 : vector<16x64xf32>
    %cst_160 = arith.constant 0.000000e+00 : f32
    %392 = vector.broadcast %cst_160 : f32 to vector<16x64xf32>
    %393 = arith.subf %392, %389 : vector<16x64xf32>
    %394 = arith.select %391, %389, %393 : vector<16x64xi1>, vector<16x64xf32>
    %cst_161 = arith.constant 1.000000e+00 : f32
    %395 = vector.broadcast %cst_161 : f32 to vector<16x64xf32>
    %396 = arith.addf %395, %394 : vector<16x64xf32>
    %397 = arith.mulf %359, %396 : vector<16x64xf32>
    %c1_162 = arith.constant 1 : index
    %c0_163 = arith.constant 0 : index
    %c0_164 = arith.constant 0 : index
    %398 = vector.load %arg12[%c1_162, %c0_163, %c0_164] : memref<2x64x32xf32, #tpu.memory_space<vmem>>, vector<1x64x32xf32>
    %399 = vector.shape_cast %398 : vector<1x64x32xf32> to vector<64x32xf32>
    %cst_165 = arith.constant dense<0.000000e+00> : vector<16x32xf32>
    %400 = tpu.matmul %397, %399, %cst_165 {dimension_numbers = #tpu.dot_dimension_numbers<[1], [0], [0], [1], [0, 0, 1, 1], [], []>} : vector<16x64xf32>, vector<64x32xf32>, vector<16x32xf32> -> vector<16x32xf32>
    %c1_166 = arith.constant 1 : index
    %c0_167 = arith.constant 0 : index
    %c0_168 = arith.constant 0 : index
    %401 = vector.load %arg13[%c1_166, %c0_167, %c0_168] : memref<2x1x32xf32, #tpu.memory_space<vmem>>, vector<1x1x32xf32>
    %402 = vector.shape_cast %401 : vector<1x1x32xf32> to vector<1x32xf32>
    %403 = vector.broadcast %402 : vector<1x32xf32> to vector<16x32xf32>
    %404 = arith.addf %400, %403 : vector<16x32xf32>
    %405 = arith.addf %404, %350 : vector<16x32xf32>
    %c1_169 = arith.constant 1 : index
    %c0_170 = arith.constant 0 : index
    %c0_171 = arith.constant 0 : index
    %406 = vector.load %arg14[%c1_169, %c0_170, %c0_171] : memref<2x1x32xf32, #tpu.memory_space<vmem>>, vector<1x1x32xf32>
    %407 = vector.shape_cast %406 : vector<1x1x32xf32> to vector<1x32xf32>
    %c1_172 = arith.constant 1 : index
    %c0_173 = arith.constant 0 : index
    %c0_174 = arith.constant 0 : index
    %408 = vector.load %arg15[%c1_172, %c0_173, %c0_174] : memref<2x1x32xf32, #tpu.memory_space<vmem>>, vector<1x1x32xf32>
    %409 = vector.shape_cast %408 : vector<1x1x32xf32> to vector<1x32xf32>
    %cst_175 = arith.constant dense<0.000000e+00> : vector<16xf32>
    %410 = vector.multi_reduction <add>, %405, %cst_175 [1] : vector<16x32xf32> to vector<16xf32>
    %411 = vector.shape_cast %410 : vector<16xf32> to vector<16x1xf32>
    %cst_176 = arith.constant 3.200000e+01 : f32
    %412 = vector.broadcast %cst_176 : f32 to vector<16x1xf32>
    %413 = arith.divf %411, %412 : vector<16x1xf32>
    %414 = vector.broadcast %413 : vector<16x1xf32> to vector<16x32xf32>
    %415 = arith.subf %405, %414 : vector<16x32xf32>
    %416 = arith.mulf %415, %415 : vector<16x32xf32>
    %cst_177 = arith.constant dense<0.000000e+00> : vector<16xf32>
    %417 = vector.multi_reduction <add>, %416, %cst_177 [1] : vector<16x32xf32> to vector<16xf32>
    %418 = vector.shape_cast %417 : vector<16xf32> to vector<16x1xf32>
    %cst_178 = arith.constant 3.200000e+01 : f32
    %419 = vector.broadcast %cst_178 : f32 to vector<16x1xf32>
    %420 = arith.divf %418, %419 : vector<16x1xf32>
    %421 = vector.broadcast %413 : vector<16x1xf32> to vector<16x32xf32>
    %422 = arith.subf %405, %421 : vector<16x32xf32>
    %cst_179 = arith.constant 9.99999996E-13 : f32
    %423 = vector.broadcast %cst_179 : f32 to vector<16x1xf32>
    %424 = arith.addf %420, %423 : vector<16x1xf32>
    %425 = math.rsqrt %424 : vector<16x1xf32>
    %426 = vector.broadcast %425 : vector<16x1xf32> to vector<16x32xf32>
    %427 = arith.mulf %422, %426 : vector<16x32xf32>
    %428 = vector.broadcast %407 : vector<1x32xf32> to vector<16x32xf32>
    %429 = arith.mulf %427, %428 : vector<16x32xf32>
    %430 = vector.broadcast %409 : vector<1x32xf32> to vector<16x32xf32>
    %431 = arith.addf %429, %430 : vector<16x32xf32>
    %432 = vector.extract_strided_slice %431 {offsets = [0, 0], sizes = [1, 32], strides = [1, 1]} : vector<16x32xf32> to vector<1x32xf32>
    %433 = vector.extract_strided_slice %431 {offsets = [8, 0], sizes = [1, 32], strides = [1, 1]} : vector<16x32xf32> to vector<1x32xf32>
    %434 = tpu.concatenate %432, %433 in 0 : vector<1x32xf32>, vector<1x32xf32> -> vector<2x32xf32>
    %c0_180 = arith.constant 0 : index
    %c0_181 = arith.constant 0 : index
    %435 = vector.load %arg16[%c0_180, %c0_181] : memref<32x32xf32, #tpu.memory_space<vmem>>, vector<32x32xf32>
    %cst_182 = arith.constant dense<0.000000e+00> : vector<2x32xf32>
    %436 = tpu.matmul %434, %435, %cst_182 {dimension_numbers = #tpu.dot_dimension_numbers<[1], [0], [0], [1], [0, 0, 1, 1], [], []>} : vector<2x32xf32>, vector<32x32xf32>, vector<2x32xf32> -> vector<2x32xf32>
    %c0_183 = arith.constant 0 : index
    %c0_184 = arith.constant 0 : index
    %437 = vector.load %arg17[%c0_183, %c0_184] : memref<1x32xf32, #tpu.memory_space<vmem>>, vector<1x32xf32>
    %438 = vector.broadcast %437 : vector<1x32xf32> to vector<2x32xf32>
    %439 = arith.addf %436, %438 : vector<2x32xf32>
    %440 = math.tanh %439 : vector<2x32xf32>
    %c0_185 = arith.constant 0 : index
    %c0_186 = arith.constant 0 : index
    %441 = vector.load %arg18[%c0_185, %c0_186] : memref<32x128xf32, #tpu.memory_space<vmem>>, vector<32x128xf32>
    %cst_187 = arith.constant dense<0.000000e+00> : vector<2x128xf32>
    %442 = tpu.matmul %440, %441, %cst_187 {dimension_numbers = #tpu.dot_dimension_numbers<[1], [0], [0], [1], [0, 0, 1, 1], [], []>} : vector<2x32xf32>, vector<32x128xf32>, vector<2x128xf32> -> vector<2x128xf32>
    %c0_188 = arith.constant 0 : index
    %c0_189 = arith.constant 0 : index
    %443 = vector.load %arg19[%c0_188, %c0_189] : memref<1x128xf32, #tpu.memory_space<vmem>>, vector<1x128xf32>
    %444 = vector.broadcast %443 : vector<1x128xf32> to vector<2x128xf32>
    %445 = arith.addf %442, %444 : vector<2x128xf32>
    %c0_190 = arith.constant 0 : index
    %c0_191 = arith.constant 0 : index
    %446 = vector.load %arg20[%c0_190, %c0_191] : memref<2x128xf32, #tpu.memory_space<vmem>>, vector<2x128xf32>
    tpu.vector_store %arg20[%c0_190, %c0_191], %445 {strides = array<i32>} : memref<2x128xf32, #tpu.memory_space<vmem>>, vector<2x128xf32>,
    return
  }
}

</mosaic_0001>

<bundles_post_ra>
// kernel: multi_output_bert_forward.1
= control target key start
LH: loop header
LB: loop body
LE: loop exit
PB: predicated region body
PF: predicated region fallthrough
CT: control target
= control target key end

     0   :  { %vm70_vm0 = vcmask 261120   ;;  %v3269_v36 = vmov 0.0   ;;  %vm3270_vm1 = vmmov 0   ;;  %s3271_s28 = smov 80   ;;  %s3273_s29 = smov 112   ;;  %vm209_vm2 = vcmask 130048   ;;  %s3817_s0 = inlined_call_operand.vmem [shape: f32[16,32], index: 0, kind: input, shape index: {}]   ;;  %s3818_s4 = inlined_call_operand.vmem [shape: f32[2,32,96], index: 4, kind: input, shape index: {}]   ;;  %s3819_s2 = inlined_call_operand.vmem [shape: f32[1,32], index: 2, kind: input, shape index: {}]   ;;  %s3820_s3 = inlined_call_operand.vmem [shape: f32[1,32], index: 3, kind: input, shape index: {}]   ;;  %s3821_s5 = inlined_call_operand.vmem [shape: f32[2,1,96], index: 5, kind: input, shape index: {}]   ;;  %s3822_s1 = inlined_call_operand.vmem [shape: f32[2,8], index: 1, kind: input, shape index: {}]   ;;  %s3823_s6 = inlined_call_operand.vmem [shape: f32[2,32,32], index: 6, kind: input, shape index: {}]   ;;  %s3824_s7 = inlined_call_operand.vmem [shape: f32[2,1,32], index: 7, kind: input, shape index: {}]   ;;  %s3825_s10 = inlined_call_operand.vmem [shape: f32[2,32,64], index: 10, kind: input, shape index: {}]   ;;  %s3826_s8 = inlined_call_operand.vmem [shape: f32[2,1,32], index: 8, kind: input, shape index: {}]   ;;  %s3827_s9 = inlined_call_operand.vmem [shape: f32[2,1,32], index: 9, kind: input, shape index: {}]   ;;  %s3828_s12 = inlined_call_operand.vmem [shape: f32[2,64,32], index: 12, kind: input, shape index: {}]   ;;  %s3829_s11 = inlined_call_operand.vmem [shape: f32[2,1,64], index: 11, kind: input, shape index: {}]   ;;  %s3830_s13 = inlined_call_operand.vmem [shape: f32[2,1,32], index: 13, kind: input, shape index: {}]   ;;  %s3831_s14 = inlined_call_operand.vmem [shape: f32[2,1,32], index: 14, kind: input, shape index: {}]   ;;  %s3832_s15 = inlined_call_operand.vmem [shape: f32[2,1,32], index: 15, kind: input, shape index: {}]   ;;  %s3833_s16 = inlined_call_operand.vmem [shape: f32[32,32], index: 16, kind: input, shape index: {}]   ;;  %s3834_s18 = inlined_call_operand.vmem [shape: f32[32,128], index: 18, kind: input, shape index: {}]   ;;  %s3835_s17 = inlined_call_operand.vmem [shape: f32[1,32], index: 17, kind: input, shape index: {}]   ;;  %s3836_s19 = inlined_call_operand.vmem [shape: f32[1,128], index: 19, kind: input, shape index: {}]   ;;  %s3837_s20 = inlined_call_operand.vmem [shape: f32[2,128], index: 20, kind: output, shape index: {}]  }
   0x1   :  { %3841 = sst [smem:[#allocation2_spill]] %s3817_s0  ;;  %2903 = vmatprep.subr.mxu1 %v3269_v36  ;;  %2905 = vmatprep.mubr.msk.f32.mxu1 %vm3270_vm1, %v3269_v36  ;;  %v285_v48 = vlaneseq  ;;  %v65_v51 = vld [vmem:[%s3822_s1] sm:$0x3]  ;;  %vm290_vm3 = vcmask 64512   ;;  %s3274_s1 = smov 48   ;;  %vm1191_vm6 = vcmask 523264  }
   0x2   :  { %3842 = sst [smem:[#allocation3_spill]] %s3818_s4  ;;  %s3846_s23 = sld [smem:[#allocation2_spill]]  ;;  %vm2528_vm9 = vcmask 1040384  }
   0x3   :  { %3843 = sst [smem:[#allocation4_spill]] %s3819_s2  ;;  %s3847_s26 = sld [smem:[#allocation3_spill]]  ;;  %v286_v49 = vshrl.u32 %v285_v48, 7 }
   0x4   :  { %3844 = sst [smem:[#allocation5_spill]] %s3820_s3  ;;  %s3848_s22 = sld [smem:[#allocation4_spill]] }
   0x5   :  { %3845 = sst [smem:[#allocation6_spill]] %s3821_s5  ;;  %s3849_s2 = sld [smem:[#allocation5_spill]]  ;;  %v287_v50 = vsub.s32 0, %v286_v49  ;;  %v630_v60 = vsub.s32 1, %v286_v49 }
   0x6   :  { %s3850_s27 = sld [smem:[#allocation6_spill]]  ;;  %s3272_s5 = smov 96  }
   0x7   :  { %v3466_v52 = vrot.slane %v65_v51, %v287_v50  ;;  %s3275_s21 = smov 64   ;;  %s3276_s0 = smov 16  }
   0x8   :  { %v66_v0 = vld [vmem:[%s3846_s23] sm:$0xff]  ;;  %v67_v1 = vld [vmem:[%s3846_s23 + $0x8] sm:$0xff] }
   0x9   :  { %v71_v2 = vsel %vm70_vm0, %v66_v0, 0.0  ;;  %v74_v3 = vsel %vm70_vm0, %v67_v1, 0.0  ;;  %v114_v14 = vld [vmem:[%s3847_s26] sm:$0xff]  ;;  %v115_v15 = vld [vmem:[%s3847_s26 + $0x8] sm:$0xff]  ;;  %v116_v16 = vld [vmem:[%s3847_s26 + $0x10] sm:$0xff] }
   0xa   :  { %72 = vadd.xlane.f32.xlu0 %v71_v2  ;;  %v3098_v17 = vpack.c.bf16 %v115_v15, %v114_v14  ;;  %v117_v18 = vld [vmem:[%s3847_s26 + $0x18] sm:$0xff]  ;;  %v2704_v27 = vld [vmem:[%s3848_s22] ss:$0 sm:$0xff] }
   0xb   :  { %v3102_v19 = vpack.c.bf16 %v117_v18, %v116_v16  ;;  %v2705_v29 = vld [vmem:[%s3849_s2] ss:$0 sm:$0xff] }
   0xc   :  { %3099 = vmatprep.subr.bf16.mxu0 %v3098_v17  ;;  %v2706_v37 = vld [vmem:[%s3850_s27] ss:$0 sm:$0xff] }
   0xd   :  { %3101 = vmatpush3.bf16.msra.mxu0 %v3098_v17 }
   0xe   :  { %75 = vadd.xlane.f32.xlu0 %v74_v3  ;;  %3103 = vmatprep.subr.bf16.mxu0 %v3102_v19 }
  0x11   :  { %3105 = vmatpush3.bf16.msra.mxu0 %v3102_v19 }
  0x12   :  { %2913 = vmatprep.subr.mxu0 %v3269_v36 }
  0x97   :  { %v73_v4 = vpop.xlane.xlu0 %72 }
  0x98   :  { %v78_v5 = vmul.f32 0.03125, %v73_v4 }
  0x9a   :  { %v80_v6 = vsub.f32 %v66_v0, %v78_v5  ;;  %v3472_v0 = vrot.slane %v65_v51, %v630_v60 }
  0x9b   :  { %v76_v7 = vpop.xlane.xlu0 %75 }
  0x9c   :  { %v79_v8 = vmul.f32 0.03125, %v76_v7  ;;  %v82_v9 = vmul.f32 %v80_v6, %v80_v6 }
  0x9e   :  { %v81_v10 = vsub.f32 %v67_v1, %v79_v8  ;;  %v84_v11 = vsel %vm70_vm0, %v82_v9, 0.0 }
  0x9f   :  { %85 = vadd.xlane.f32.xlu1 %v84_v11 }
  0xa0   :  { %v83_v12 = vmul.f32 %v81_v10, %v81_v10 }
  0xa2   :  { %v87_v13 = vsel %vm70_vm0, %v83_v12, 0.0 }
  0xa3   :  { %88 = vadd.xlane.f32.xlu1 %v87_v13 }
 0x12c   :  { %v86_v20 = vpop.xlane.xlu1 %85 }
 0x12d   :  { %v90_v21 = vmul.f32 0.03125, %v86_v20 }
 0x12f   :  { %v92_v22 = vadd.f32 1e-12, %v90_v21 }
 0x130   :  { %v89_v23 = vpop.xlane.xlu1 %88 }
 0x131   :  { %3199 = vrsqrt.f32 %v92_v22  ;;  %v91_v24 = vmul.f32 0.03125, %v89_v23 }
 0x133   :  { %v93_v25 = vadd.f32 1e-12, %v91_v24 }
 0x135   :  { %3201 = vrsqrt.f32 %v93_v25 }
 0x13b   :  { %v3200_v26 = vpop.eup %3199 }
 0x13c   :  { %v96_v28 = vmul.f32 %v3200_v26, %v80_v6 }
 0x13e   :  { %v104_v30 = vmul.f32 %v2704_v27, %v96_v28 }
 0x13f   :  { %v3202_v31 = vpop.eup %3201 }
 0x140   :  { %v97_v32 = vmul.f32 %v3202_v31, %v81_v10  ;;  %v3411_v33 = vadd.f32 %v2705_v29, %v104_v30 }
 0x142   :  { %v105_v34 = vmul.f32 %v2704_v27, %v97_v32  ;;  %2900 = vmatprep.mubr.msk.f32.mxu0 %vm70_vm0, %v3411_v33 }
 0x144   :  { %v3415_v35 = vadd.f32 %v2705_v29, %v105_v34 }
 0x146   :  { %2901 = vmatmul.mubr.msk.f32.vlgmr.msra.gmra.mrb[0].mxu0 %vm70_vm0, %v3415_v35 }
 0x147   :  { %2915 = vmatprep.mubr.msk.f32.mxu0 %vm3270_vm1, %v3269_v36 }
 0x219   :  { %v2902_v38 = vpop.f32.mrb[0].mxu0 }
 0x21a   :  { %v197_v39 = vpop.f32.mrb[1].mxu0  ;;  %v3434_v41 = vadd.f32 %v2902_v38, %v2706_v37 }
 0x21b   :  { %v3428_v40 = vadd.f32 %v2706_v37, %v197_v39  ;;  %v892_v39 = vld [vmem:[%s3823_s6] sm:$0xff] }
 0x21d   :  { %380 = vrot.lane.b32.xlu1 %v3428_v40, %s3271_s28  ;;  %207 = vrot.lane.b32.xlu0 %v3428_v40, %s3272_s5 }
 0x221   :  { %378 = vrot.lane.b32.xlu1 %v3428_v40, %s3273_s29  ;;  %722 = vrot.lane.b32.xlu0 %v3434_v41, %s3271_s28 }
 0x225   :  { %551 = vrot.lane.b32.xlu1 %v3434_v41, %s3272_s5 }
 0x229   :  { %720 = vrot.lane.b32.xlu1 %v3434_v41, %s3273_s29 }
 0x28f   :  { %v381_v42 = vpop.permute.xlu1 %380  ;;  %v208_v43 = vpop.permute.xlu0 %207 }
 0x290   :  { %2904 = vmatpush3.xpose.msk.msra.mxu1 %vm209_vm2, %v208_v43  ;;  %2914 = vmatpush3.xpose.msk.msra.mxu0 %vm209_vm2, %v381_v42  ;;  %v894_v42 = vld [vmem:[%s3823_s6 + $0x10] sm:$0xff]  ;;  %v895_v43 = vld [vmem:[%s3823_s6 + $0x18] sm:$0xff] }
 0x291   :  { %2923 = vmatprep.subr.mxu0 %v3269_v36  ;;  %2908 = vmatprep.subr.mxu1 %v3269_v36 }
 0x293   :  { %v379_v44 = vpop.permute.xlu1 %378  ;;  %2906 = vmatmul.mubr.msk.f32.vlgmr.msra.gmra.mrb[0].mxu1 %vm209_vm2, %v3428_v40  ;;  %v723_v46 = vpop.permute.xlu0 %722 }
 0x294   :  { %2916 = vmatmul.mubr.msk.f32.vlgmr.msra.gmra.mrb[2].mxu0 %vm209_vm2, %v379_v44  ;;  %2910 = vmatprep.mubr.msk.f32.mxu1 %vm3270_vm1, %v3269_v36  ;;  %v3110_v44 = vpack.c.bf16 %v895_v43, %v894_v42  ;;  %v2725_v43 = vld [vmem:[%s3827_s9] ss:$0 sm:$0xff] }
 0x295   :  { %2925 = vmatprep.mubr.msk.f32.mxu0 %vm3270_vm1, %v3269_v36 }
 0x297   :  { %v552_v45 = vpop.permute.xlu1 %551 }
 0x298   :  { %2924 = vmatpush3.xpose.msk.msra.mxu0 %vm209_vm2, %v552_v45 }
 0x299   :  { %2933 = vmatprep.subr.mxu0 %v3269_v36 }
 0x29b   :  { %2926 = vmatmul.mubr.msk.f32.vlgmr.msra.gmra.mrb[4].mxu0 %vm209_vm2, %v3434_v41  ;;  %v721_v47 = vpop.permute.xlu1 %720 }
 0x29c   :  { %2934 = vmatpush3.xpose.msk.msra.mxu0 %vm209_vm2, %v723_v46  ;;  %2935 = vmatprep.mubr.msk.f32.mxu0 %vm3270_vm1, %v3269_v36 }
 0x29f   :  { %2936 = vmatmul.mubr.msk.f32.vlgmr.msra.gmra.mrb[6].mxu0 %vm209_vm2, %v721_v47 }
 0x366   :  { %v280_v53 = vpop.f32.mrb[0].mxu1 }
 0x367   :  { %v284_v54 = vmul.f32 0.25, %v280_v53  ;;  %v2907_v55 = vpop.f32.mrb[1].mxu1  ;;  %v452_v56 = vpop.f32.mrb[2].mxu0 }
 0x368   :  { %v456_v57 = vmul.f32 0.25, %v452_v56  ;;  %v2917_v58 = vpop.f32.mrb[3].mxu0 }
 0x369   :  { %v289_v59 = vadd.f32 %v3466_v52, %v284_v54 }
 0x36a   :  { %v457_v61 = vadd.f32 %v456_v57, %v3466_v52 }
 0x36b   :  { %v291_v62 = vsel %vm290_vm3, %v289_v59, -inf }
 0x36c   :  { %292 = vmax.xlane.f32.xlu0 %v291_v62  ;;  %v458_v63 = vsel %vm290_vm3, %v457_v61, -inf }
 0x36d   :  { %459 = vmax.xlane.f32.xlu1 %v458_v63 }
 0x36e   :  { %v623_v1 = vpop.f32.mrb[4].mxu0 }
 0x36f   :  { %v627_v2 = vmul.f32 0.25, %v623_v1  ;;  %v2927_v3 = vpop.f32.mrb[5].mxu0 }
 0x371   :  { %v632_v4 = vadd.f32 %v3472_v0, %v627_v2 }
 0x372   :  { %v794_v5 = vpop.f32.mrb[6].mxu0 }
 0x373   :  { %v798_v6 = vmul.f32 0.25, %v794_v5  ;;  %v2937_v7 = vpop.f32.mrb[7].mxu0  ;;  %v633_v8 = vsel %vm290_vm3, %v632_v4, -inf }
 0x374   :  { %634 = vmax.xlane.f32.xlu0 %v633_v8 }
 0x375   :  { %v799_v9 = vadd.f32 %v798_v6, %v3472_v0  ;;  %v2721_v6 = vld [vmem:[%s3824_s7] ss:$0 sm:$0xff] }
 0x377   :  { %v800_v10 = vsel %vm290_vm3, %v799_v9, -inf }
 0x378   :  { %801 = vmax.xlane.f32.xlu0 %v800_v10 }
 0x37e   :  { %467 = vrot.lane.b32.xlu1 %v3428_v40, %s3274_s1 }
 0x382   :  { %642 = vrot.lane.b32.xlu1 %v3434_v41, %s3275_s21 }
 0x386   :  { %809 = vrot.lane.b32.xlu1 %v3434_v41, %s3274_s1 }
 0x38e   :  { %300 = vrot.lane.b32.xlu0 %v3428_v40, %s3275_s21  ;;  %v893_v40 = vld [vmem:[%s3823_s6 + $0x8] sm:$0xff] }
 0x38f   :  { %v3106_v41 = vpack.c.bf16 %v893_v40, %v892_v39  ;;  %v2724_v39 = vld [vmem:[%s3826_s8] ss:$0 sm:$0xff] }
 0x391   :  { %3107 = vmatprep.subr.bf16.mxu0 %v3106_v41 }
 0x392   :  { %3109 = vmatpush3.bf16.msra.mxu0 %v3106_v41 }
 0x393   :  { %3111 = vmatprep.subr.bf16.mxu0 %v3110_v44 }
 0x396   :  { %3113 = vmatpush3.bf16.msra.mxu0 %v3110_v44 }
 0x3f9   :  { %v293_v11 = vpop.xlane.xlu0 %292 }
 0x3fa   :  { %v294_v12 = vsub.f32 %v289_v59, %v293_v11  ;;  %v460_v13 = vpop.xlane.xlu1 %459 }
 0x3fb   :  { %v461_v14 = vsub.f32 %v457_v61, %v460_v13 }
 0x3fc   :  { %v295_v15 = vmul.f32 1.442695, %v294_v12 }
 0x3fd   :  { %v462_v16 = vmul.f32 1.442695, %v461_v14 }
 0x3fe   :  { %v468_v22 = vpop.permute.xlu1 %467 }
 0x3ff   :  { %3203 = vpow2.f32 %v462_v16 }
 0x400   :  { %3205 = vpow2.f32 %v295_v15 }
 0x401   :  { %v635_v17 = vpop.xlane.xlu0 %634 }
 0x402   :  { %v636_v18 = vsub.f32 %v632_v4, %v635_v17  ;;  %v643_v28 = vpop.permute.xlu1 %642 }
 0x404   :  { %v637_v19 = vmul.f32 1.442695, %v636_v18 }
 0x405   :  { %v802_v20 = vpop.xlane.xlu0 %801 }
 0x406   :  { %3207 = vpow2.f32 %v637_v19  ;;  %v803_v21 = vsub.f32 %v799_v9, %v802_v20  ;;  %v810_v32 = vpop.permute.xlu1 %809 }
 0x408   :  { %v804_v23 = vmul.f32 1.442695, %v803_v21 }
 0x409   :  { %v3204_v24 = vpop.eup %3203  ;;  %v301_v25 = vpop.permute.xlu0 %300 }
 0x40a   :  { %v3206_v26 = vpop.eup %3205  ;;  %3209 = vpow2.f32 %v804_v23  ;;  %2909 = vmatpush3.msra.mxu1 %v301_v25  ;;  %v464_v27 = vsel %vm290_vm3, %v3204_v24, 0.0 }
 0x40b   :  { %465 = vadd.xlane.f32.xlu0 %v464_v27  ;;  %2911 = vmatmul.mubr.msk.f32.vlgmr.msra.gmra.mrb[2].mxu1 %vm290_vm3, %v3206_v26  ;;  %v297_v29 = vsel %vm290_vm3, %v3206_v26, 0.0  ;;  %v1032_v26 = vld [vmem:[%s3825_s10 + $0x10] sm:$0xff]  ;;  %v1033_v27 = vld [vmem:[%s3825_s10 + $0x18] sm:$0xff] }
 0x40c   :  { %2918 = vmatprep.subr.mxu1 %v3269_v36  ;;  %2920 = vmatprep.mubr.msk.f32.mxu1 %vm3270_vm1, %v3269_v36 }
 0x40d   :  { %2919 = vmatpush3.msra.mxu1 %v468_v22 }
 0x40e   :  { %2928 = vmatprep.subr.mxu1 %v3269_v36 }
 0x40f   :  { %298 = vadd.xlane.f32.xlu0 %v297_v29  ;;  %2921 = vmatmul.mubr.msk.f32.vlgmr.msra.gmra.mrb[4].mxu1 %vm290_vm3, %v3204_v24  ;;  %v1031_v24 = vld [vmem:[%s3825_s10 + $0x8] sm:$0xff] }
 0x410   :  { %v3208_v30 = vpop.eup %3207  ;;  %2929 = vmatpush3.msra.mxu1 %v643_v28  ;;  %2930 = vmatprep.mubr.msk.f32.mxu1 %vm3270_vm1, %v3269_v36  ;;  %v3118_v28 = vpack.c.bf16 %v1033_v27, %v1032_v26 }
 0x411   :  { %2938 = vmatprep.subr.mxu1 %v3269_v36  ;;  %v639_v31 = vsel %vm290_vm3, %v3208_v30, 0.0 }
 0x413   :  { %640 = vadd.xlane.f32.xlu0 %v639_v31  ;;  %2931 = vmatmul.mubr.msk.f32.vlgmr.msra.gmra.mrb[6].mxu1 %vm290_vm3, %v3208_v30 }
 0x414   :  { %v3210_v34 = vpop.eup %3209  ;;  %2939 = vmatpush3.msra.mxu1 %v810_v32  ;;  %2940 = vmatprep.mubr.msk.f32.mxu1 %vm3270_vm1, %v3269_v36 }
 0x415   :  { %v806_v37 = vsel %vm290_vm3, %v3210_v34, 0.0 }
 0x416   :  { %807 = vadd.xlane.f32.xlu1 %v806_v37 }
 0x417   :  { %2941 = vmatmul.mubr.msk.f32.vlgmr.msra.gmra.mrb[8].mxu1 %vm290_vm3, %v3210_v34 }
 0x498   :  { %v466_v38 = vpop.xlane.xlu0 %465 }
 0x499   :  { %3211 = vrcp.f32 %v466_v38 }
 0x49c   :  { %v299_v59 = vpop.xlane.xlu0 %298 }
 0x4a0   :  { %v641_v60 = vpop.xlane.xlu0 %640 }
 0x4a3   :  { %v808_v45 = vpop.xlane.xlu1 %807  ;;  %v3212_v48 = vpop.eup %3211 }
 0x4a4   :  { %3213 = vrcp.f32 %v808_v45 }
 0x4a5   :  { %3215 = vrcp.f32 %v299_v59  ;;  %v1183_v59 = vld [vmem:[%s3828_s12 + $0x38] sm:$0xff] }
 0x4a6   :  { %3217 = vrcp.f32 %v641_v60 }
 0x4ae   :  { %v3214_v55 = vpop.eup %3213 }
 0x4af   :  { %v3216_v61 = vpop.eup %3215 }
 0x4b0   :  { %v3218_v2 = vpop.eup %3217 }
 0x4de   :  { %v372_v46 = vpop.f32.mrb[2].mxu1 }
 0x4df   :  { %v2912_v47 = vpop.f32.mrb[3].mxu1  ;;  %v377_v62 = vmul.f32 %v3216_v61, %v372_v46  ;;  %v2726_v61 = vld [vmem:[%s3829_s11] ss:$0 sm:$0xff] }
 0x4e2   :  { %v539_v49 = vpop.f32.mrb[4].mxu1 }
 0x4e3   :  { %v544_v50 = vmul.f32 %v3212_v48, %v539_v49  ;;  %v2922_v51 = vpop.f32.mrb[5].mxu1  ;;  %v1176_v48 = vld [vmem:[%s3828_s12] sm:$0xff]  ;;  %v1177_v49 = vld [vmem:[%s3828_s12 + $0x8] sm:$0xff] }
 0x4e4   :  { %v1178_v51 = vld [vmem:[%s3828_s12 + $0x10] sm:$0xff] }
 0x4e5   :  { %546 = vrot.lane.b32.xlu0 %v544_v50, %s3276_s0  ;;  %v3122_v50 = vpack.c.bf16 %v1177_v49, %v1176_v48 }
 0x4e6   :  { %v714_v53 = vpop.f32.mrb[6].mxu1 }
 0x4e7   :  { %v2932_v54 = vpop.f32.mrb[7].mxu1  ;;  %v719_v3 = vmul.f32 %v3218_v2, %v714_v53  ;;  %3123 = vmatprep.subr.bf16.mxu0 %v3122_v50  ;;  %v1179_v53 = vld [vmem:[%s3828_s12 + $0x18] sm:$0xff] }
 0x4e8   :  { %v3126_v54 = vpack.c.bf16 %v1179_v53, %v1178_v51 }
 0x4ea   :  { %v881_v56 = vpop.f32.mrb[8].mxu1 }
 0x4eb   :  { %v886_v57 = vmul.f32 %v3214_v55, %v881_v56  ;;  %v2942_v58 = vpop.f32.mrb[9].mxu1  ;;  %v1180_v55 = vld [vmem:[%s3828_s12 + $0x20] sm:$0xff]  ;;  %v1181_v56 = vld [vmem:[%s3828_s12 + $0x28] sm:$0xff] }
 0x4ec   :  { %v1182_v58 = vld [vmem:[%s3828_s12 + $0x30] sm:$0xff] }
 0x4ed   :  { %888 = vrot.lane.b32.xlu1 %v886_v57, %s3276_s0  ;;  %v3130_v57 = vpack.c.bf16 %v1181_v56, %v1180_v55  ;;  %v3134_v60 = vpack.c.bf16 %v1183_v59, %v1182_v58 }
 0x557   :  { %v547_v63 = vpop.permute.xlu0 %546 }
 0x558   :  { %v549_v1 = vsel %vm209_vm2, %v377_v62, %v547_v63 }
 0x559   :  { %2951 = vmatprep.mubr.msk.f32.mxu0 %vm70_vm0, %v549_v1 }
 0x55f   :  { %v889_v4 = vpop.permute.xlu1 %888 }
 0x560   :  { %v891_v5 = vsel %vm209_vm2, %v719_v3, %v889_v4 }
 0x561   :  { %2952 = vmatmul.mubr.msk.f32.vlgmr.msra.gmra.mrb[8].mxu0 %vm70_vm0, %v891_v5 }
 0x562   :  { %3125 = vmatpush3.bf16.msra.mxu0 %v3122_v50 }
 0x563   :  { %3127 = vmatprep.subr.bf16.mxu0 %v3126_v54 }
 0x566   :  { %3129 = vmatpush3.bf16.msra.mxu0 %v3126_v54 }
 0x567   :  { %3131 = vmatprep.subr.bf16.mxu0 %v3130_v57 }
 0x56a   :  { %3133 = vmatpush3.bf16.msra.mxu0 %v3130_v57  ;;  %v2729_v57 = vld [vmem:[%s3830_s13] ss:$0 sm:$0xff] }
 0x56b   :  { %3135 = vmatprep.subr.bf16.mxu0 %v3134_v60 }
 0x56e   :  { %3137 = vmatpush3.bf16.msra.mxu0 %v3134_v60 }
 0x56f   :  { %3005 = vmatprep.subr.mxu0 %v3269_v36 }
 0x634   :  { %v2953_v7 = vpop.f32.mrb[8].mxu0 }
 0x635   :  { %v981_v8 = vadd.f32 %v2953_v7, %v2721_v6  ;;  %v975_v9 = vpop.f32.mrb[9].mxu0 }
 0x636   :  { %v976_v10 = vadd.f32 %v2721_v6, %v975_v9 }
 0x637   :  { %v985_v11 = vadd.f32 %v981_v8, %v3415_v35 }
 0x638   :  { %v984_v12 = vadd.f32 %v976_v10, %v3411_v33  ;;  %v1030_v33 = vld [vmem:[%s3825_s10] sm:$0xff] }
 0x639   :  { %v991_v13 = vsel %vm70_vm0, %v985_v11, 0.0  ;;  %v3114_v25 = vpack.c.bf16 %v1031_v24, %v1030_v33 }
 0x63a   :  { %992 = vadd.xlane.f32.xlu0 %v991_v13  ;;  %v988_v14 = vsel %vm70_vm0, %v984_v12, 0.0 }
 0x63b   :  { %989 = vadd.xlane.f32.xlu1 %v988_v14  ;;  %3115 = vmatprep.subr.bf16.mxu1 %v3114_v25 }
 0x63c   :  { %3117 = vmatpush3.bf16.msra.mxu1 %v3114_v25 }
 0x63d   :  { %3119 = vmatprep.subr.bf16.mxu1 %v3118_v28 }
 0x640   :  { %3121 = vmatpush3.bf16.msra.mxu1 %v3118_v28 }
 0x6c7   :  { %v993_v15 = vpop.xlane.xlu0 %992 }
 0x6c8   :  { %v995_v16 = vmul.f32 0.03125, %v993_v15  ;;  %v990_v17 = vpop.xlane.xlu1 %989 }
 0x6c9   :  { %v994_v18 = vmul.f32 0.03125, %v990_v17 }
 0x6ca   :  { %v997_v19 = vsub.f32 %v985_v11, %v995_v16 }
 0x6cb   :  { %v996_v20 = vsub.f32 %v984_v12, %v994_v18 }
 0x6cc   :  { %v999_v21 = vmul.f32 %v997_v19, %v997_v19 }
 0x6cd   :  { %v998_v22 = vmul.f32 %v996_v20, %v996_v20 }
 0x6ce   :  { %v1003_v23 = vsel %vm70_vm0, %v999_v21, 0.0 }
 0x6cf   :  { %1004 = vadd.xlane.f32.xlu1 %v1003_v23  ;;  %v1000_v35 = vsel %vm70_vm0, %v998_v22, 0.0 }
 0x6d0   :  { %1001 = vadd.xlane.f32.xlu0 %v1000_v35 }
 0x75c   :  { %v1005_v29 = vpop.xlane.xlu1 %1004 }
 0x75d   :  { %v1007_v30 = vmul.f32 0.03125, %v1005_v29  ;;  %v1002_v31 = vpop.xlane.xlu0 %1001 }
 0x75e   :  { %v1006_v32 = vmul.f32 0.03125, %v1002_v31 }
 0x75f   :  { %v1009_v34 = vadd.f32 1e-12, %v1007_v30 }
 0x760   :  { %v1008_v37 = vadd.f32 1e-12, %v1006_v32 }
 0x761   :  { %3219 = vrsqrt.f32 %v1009_v34 }
 0x762   :  { %3221 = vrsqrt.f32 %v1008_v37 }
 0x76b   :  { %v3220_v38 = vpop.eup %3219 }
 0x76c   :  { %v3222_v40 = vpop.eup %3221  ;;  %v1013_v41 = vmul.f32 %v3220_v38, %v997_v19 }
 0x76d   :  { %v1012_v42 = vmul.f32 %v3222_v40, %v996_v20 }
 0x76e   :  { %v1021_v44 = vmul.f32 %v2724_v39, %v1013_v41 }
 0x76f   :  { %v1020_v45 = vmul.f32 %v2724_v39, %v1012_v42 }
 0x770   :  { %v3550_v47 = vadd.f32 %v2725_v43, %v1021_v44 }
 0x771   :  { %v3548_v46 = vadd.f32 %v2725_v43, %v1020_v45 }
 0x773   :  { %2962 = vmatprep.mubr.msk.f32.mxu1 %vm70_vm0, %v3548_v46 }
 0x774   :  { %2963 = vmatmul.mubr.msk.f32.vlgmr.msra.gmra.mrb[10].mxu1 %vm70_vm0, %v3550_v47 }
 0x847   :  { %v2964_v62 = vpop.f32.mrb[10].mxu1 }
 0x848   :  { %v1119_v63 = vadd.f32 %v2964_v62, %v2726_v61  ;;  %v1113_v1 = vpop.f32.mrb[11].mxu1 }
 0x849   :  { %v1114_v2 = vadd.f32 %v2726_v61, %v1113_v1 }
 0x84a   :  { %v1125_v3 = vmul.f32 0.70710677, %v1119_v63  ;;  %v1123_v54 = vmul.f32 0.5, %v1119_v63 }
 0x84b   :  { %v1124_v4 = vmul.f32 0.70710677, %v1114_v2  ;;  %v1122_v51 = vmul.f32 0.5, %v1114_v2 }
 0x84c   :  { %v1127_v5 = vand.u32 2147483647, %v1125_v3  ;;  %vm1167_vm4 = vcmp.ge.f32.partialorder %v1125_v3, 0.0 }
 0x84d   :  { %v1126_v6 = vand.u32 2147483647, %v1124_v4  ;;  %vm1166_vm5 = vcmp.ge.f32.partialorder %v1124_v4, 0.0 }
 0x84e   :  { %v1129_v7 = vmul.f32 0.3275911, %v1127_v5  ;;  %v1155_v11 = vsub.f32 0.0, %v1127_v5 }
 0x84f   :  { %v1128_v8 = vmul.f32 0.3275911, %v1126_v6  ;;  %v1154_v12 = vsub.f32 0.0, %v1126_v6 }
 0x850   :  { %v1131_v9 = vadd.f32 1.0, %v1129_v7  ;;  %v1157_v14 = vmul.f32 %v1155_v11, %v1127_v5 }
 0x851   :  { %v1130_v10 = vadd.f32 1.0, %v1128_v8  ;;  %v1156_v17 = vmul.f32 %v1154_v12, %v1126_v6  ;;  %v2735_v12 = vld [vmem:[%s3847_s26 + $0x28] sm:$0xff] }
 0x852   :  { %3223 = vrcp.f32 %v1131_v9  ;;  %v1160_v20 = vmul.f32 1.442695, %v1157_v14  ;;  %v2736_v14 = vld [vmem:[%s3847_s26 + $0x30] sm:$0xff] }
 0x853   :  { %3225 = vrcp.f32 %v1130_v10  ;;  %v1158_v23 = vmul.f32 1.442695, %v1156_v17 }
 0x854   :  { %3227 = vpow2.f32 %v1160_v20 }
 0x855   :  { %3229 = vpow2.f32 %v1158_v23 }
 0x85c   :  { %v3224_v13 = vpop.eup %3223 }
 0x85d   :  { %v3226_v15 = vpop.eup %3225  ;;  %v1137_v16 = vmul.f32 1.0614054, %v3224_v13 }
 0x85e   :  { %v1136_v18 = vmul.f32 1.0614054, %v3226_v15  ;;  %v3228_v37 = vpop.eup %3227 }
 0x85f   :  { %v1139_v19 = vadd.f32 -1.4531521, %v1137_v16  ;;  %v3230_v39 = vpop.eup %3229 }
 0x860   :  { %v1138_v21 = vadd.f32 -1.4531521, %v1136_v18 }
 0x861   :  { %v1141_v22 = vmul.f32 %v3224_v13, %v1139_v19 }
 0x862   :  { %v1140_v35 = vmul.f32 %v3226_v15, %v1138_v21 }
 0x863   :  { %v1143_v33 = vadd.f32 1.4214138, %v1141_v22 }
 0x864   :  { %v1142_v24 = vadd.f32 1.4214138, %v1140_v35  ;;  %v2732_v35 = vld [vmem:[%s3831_s14] ss:$0 sm:$0xff] }
 0x865   :  { %v1145_v25 = vmul.f32 %v3224_v13, %v1143_v33 }
 0x866   :  { %v1144_v26 = vmul.f32 %v3226_v15, %v1142_v24 }
 0x867   :  { %v1147_v27 = vadd.f32 -0.28449672, %v1145_v25 }
 0x868   :  { %v1146_v28 = vadd.f32 -0.28449672, %v1144_v26  ;;  %v2733_v26 = vld [vmem:[%s3832_s15] ss:$0 sm:$0xff] }
 0x869   :  { %v1149_v29 = vmul.f32 %v3224_v13, %v1147_v27 }
 0x86a   :  { %v1148_v30 = vmul.f32 %v3226_v15, %v1146_v28 }
 0x86b   :  { %v1151_v31 = vadd.f32 0.2548296, %v1149_v29 }
 0x86c   :  { %v1150_v32 = vadd.f32 0.2548296, %v1148_v30 }
 0x86d   :  { %v1153_v34 = vmul.f32 %v3224_v13, %v1151_v31  ;;  %v2739_v31 = vld [vmem:[%s3850_s27 + $0x1] ss:$0 sm:$0xff] }
 0x86e   :  { %v1152_v38 = vmul.f32 %v3226_v15, %v1150_v32  ;;  %v2737_v15 = vld [vmem:[%s3847_s26 + $0x38] sm:$0xff] }
 0x86f   :  { %v1163_v40 = vmul.f32 %v3228_v37, %v1153_v34  ;;  %v3142_v16 = vpack.c.bf16 %v2737_v15, %v2736_v14 }
 0x870   :  { %v1162_v41 = vmul.f32 %v3230_v39, %v1152_v38 }
 0x871   :  { %v1165_v42 = vsub.f32 1.0, %v1163_v40 }
 0x872   :  { %v1164_v43 = vsub.f32 1.0, %v1162_v41 }
 0x873   :  { %v1169_v44 = vsub.f32 0.0, %v1165_v42 }
 0x874   :  { %v1168_v45 = vsub.f32 0.0, %v1164_v43 }
 0x875   :  { %v1171_v48 = vsel %vm1167_vm4, %v1165_v42, %v1169_v44 }
 0x876   :  { %v1173_v49 = vadd.f32 1.0, %v1171_v48  ;;  %v1170_v50 = vsel %vm1166_vm5, %v1164_v43, %v1168_v45 }
 0x877   :  { %v1172_v53 = vadd.f32 1.0, %v1170_v50 }
 0x878   :  { %v1175_v56 = vmul.f32 %v1173_v49, %v1123_v54 }
 0x879   :  { %v1174_v55 = vmul.f32 %v1172_v53, %v1122_v51 }
 0x87b   :  { %2981 = vmatprep.mubr.msk.f32.mxu0 %vm1191_vm6, %v1174_v55 }
 0x87c   :  { %2982 = vmatmul.mubr.msk.f32.vlgmr.msra.gmra.mrb[10].mxu0 %vm1191_vm6, %v1175_v56 }
 0x87d   :  { %3007 = vmatprep.mubr.msk.f32.mxu0 %vm3270_vm1, %v3269_v36 }
 0x94f   :  { %v2983_v58 = vpop.f32.mrb[10].mxu0 }
 0x950   :  { %v1270_v59 = vadd.f32 %v2983_v58, %v2729_v57  ;;  %v1264_v60 = vpop.f32.mrb[11].mxu0 }
 0x951   :  { %v1265_v61 = vadd.f32 %v2729_v57, %v1264_v60 }
 0x952   :  { %v1274_v62 = vadd.f32 %v1270_v59, %v3550_v47 }
 0x953   :  { %v1273_v63 = vadd.f32 %v1265_v61, %v3548_v46  ;;  %v2734_v46 = vld [vmem:[%s3847_s26 + $0x20] sm:$0xff] }
 0x954   :  { %v1280_v1 = vsel %vm70_vm0, %v1274_v62, 0.0  ;;  %v3138_v13 = vpack.c.bf16 %v2735_v12, %v2734_v46 }
 0x955   :  { %1281 = vadd.xlane.f32.xlu1 %v1280_v1  ;;  %v1277_v2 = vsel %vm70_vm0, %v1273_v63, 0.0 }
 0x956   :  { %1278 = vadd.xlane.f32.xlu0 %v1277_v2  ;;  %3139 = vmatprep.subr.bf16.mxu1 %v3138_v13 }
 0x957   :  { %3141 = vmatpush3.bf16.msra.mxu1 %v3138_v13 }
 0x958   :  { %3143 = vmatprep.subr.bf16.mxu1 %v3142_v16 }
 0x95b   :  { %3145 = vmatpush3.bf16.msra.mxu1 %v3142_v16 }
 0x95c   :  { %2995 = vmatprep.subr.mxu1 %v3269_v36 }
 0x9e2   :  { %v1282_v3 = vpop.xlane.xlu1 %1281 }
 0x9e3   :  { %v1284_v4 = vmul.f32 0.03125, %v1282_v3  ;;  %v1279_v5 = vpop.xlane.xlu0 %1278 }
 0x9e4   :  { %v1283_v6 = vmul.f32 0.03125, %v1279_v5 }
 0x9e5   :  { %v1286_v7 = vsub.f32 %v1274_v62, %v1284_v4 }
 0x9e6   :  { %v1285_v8 = vsub.f32 %v1273_v63, %v1283_v6 }
 0x9e7   :  { %v1288_v9 = vmul.f32 %v1286_v7, %v1286_v7 }
 0x9e8   :  { %v1287_v10 = vmul.f32 %v1285_v8, %v1285_v8 }
 0x9e9   :  { %v1292_v11 = vsel %vm70_vm0, %v1288_v9, 0.0 }
 0x9ea   :  { %1293 = vadd.xlane.f32.xlu1 %v1292_v11  ;;  %v1289_v47 = vsel %vm70_vm0, %v1287_v10, 0.0 }
 0x9eb   :  { %1290 = vadd.xlane.f32.xlu0 %v1289_v47 }
 0xa77   :  { %v1294_v17 = vpop.xlane.xlu1 %1293 }
 0xa78   :  { %v1296_v18 = vmul.f32 0.03125, %v1294_v17  ;;  %v1291_v19 = vpop.xlane.xlu0 %1290 }
 0xa79   :  { %v1295_v20 = vmul.f32 0.03125, %v1291_v19 }
 0xa7a   :  { %v1298_v21 = vadd.f32 1e-12, %v1296_v18 }
 0xa7b   :  { %v1297_v22 = vadd.f32 1e-12, %v1295_v20 }
 0xa7c   :  { %3231 = vrsqrt.f32 %v1298_v21 }
 0xa7d   :  { %3233 = vrsqrt.f32 %v1297_v22 }
 0xa86   :  { %v3232_v23 = vpop.eup %3231 }
 0xa87   :  { %v3234_v33 = vpop.eup %3233  ;;  %v1302_v24 = vmul.f32 %v3232_v23, %v1286_v7 }
 0xa88   :  { %v1301_v25 = vmul.f32 %v3234_v33, %v1285_v8 }
 0xa89   :  { %v1310_v27 = vmul.f32 %v2732_v35, %v1302_v24  ;;  %v2754_v24 = vld [vmem:[%s3823_s6 + $0x20] sm:$0xff] }
 0xa8a   :  { %v1309_v28 = vmul.f32 %v2732_v35, %v1301_v25  ;;  %v2755_v25 = vld [vmem:[%s3823_s6 + $0x28] sm:$0xff] }
 0xa8b   :  { %v3618_v30 = vadd.f32 %v2733_v26, %v1310_v27  ;;  %v2756_v27 = vld [vmem:[%s3823_s6 + $0x30] sm:$0xff] }
 0xa8c   :  { %v3616_v29 = vadd.f32 %v2733_v26, %v1309_v28  ;;  %v3146_v26 = vpack.c.bf16 %v2755_v25, %v2754_v24  ;;  %v2757_v28 = vld [vmem:[%s3823_s6 + $0x38] sm:$0xff] }
 0xa8e   :  { %2992 = vmatprep.mubr.msk.f32.mxu1 %vm70_vm0, %v3616_v29 }
 0xa8f   :  { %2993 = vmatmul.mubr.msk.f32.vlgmr.msra.gmra.mrb[12].mxu1 %vm70_vm0, %v3618_v30 }
 0xa90   :  { %2997 = vmatprep.mubr.msk.f32.mxu1 %vm3270_vm1, %v3269_v36 }
 0xb62   :  { %v2994_v32 = vpop.f32.mrb[12].mxu1 }
 0xb63   :  { %v1404_v34 = vpop.f32.mrb[13].mxu1  ;;  %v1410_v38 = vadd.f32 %v2994_v32, %v2739_v31 }
 0xb64   :  { %v1405_v37 = vadd.f32 %v2739_v31, %v1404_v34  ;;  %v3150_v31 = vpack.c.bf16 %v2757_v28, %v2756_v27 }
 0xb66   :  { %1581 = vrot.lane.b32.xlu1 %v1405_v37, %s3271_s28  ;;  %1414 = vrot.lane.b32.xlu0 %v1405_v37, %s3272_s5 }
 0xb6a   :  { %1579 = vrot.lane.b32.xlu1 %v1405_v37, %s3273_s29  ;;  %1919 = vrot.lane.b32.xlu0 %v1410_v38, %s3271_s28 }
 0xb6e   :  { %1752 = vrot.lane.b32.xlu1 %v1410_v38, %s3272_s5 }
 0xb72   :  { %1917 = vrot.lane.b32.xlu1 %v1410_v38, %s3273_s29 }
 0xbd8   :  { %v1582_v39 = vpop.permute.xlu1 %1581  ;;  %v1415_v40 = vpop.permute.xlu0 %1414 }
 0xbd9   :  { %2996 = vmatpush3.xpose.msk.msra.mxu1 %vm209_vm2, %v1415_v40  ;;  %3006 = vmatpush3.xpose.msk.msra.mxu0 %vm209_vm2, %v1582_v39 }
 0xbda   :  { %3015 = vmatprep.subr.mxu0 %v3269_v36  ;;  %3000 = vmatprep.subr.mxu1 %v3269_v36 }
 0xbdc   :  { %v1580_v41 = vpop.permute.xlu1 %1579  ;;  %2998 = vmatmul.mubr.msk.f32.vlgmr.msra.gmra.mrb[14].mxu1 %vm209_vm2, %v1405_v37  ;;  %v1920_v43 = vpop.permute.xlu0 %1919 }
 0xbdd   :  { %3008 = vmatmul.mubr.msk.f32.vlgmr.msra.gmra.mrb[12].mxu0 %vm209_vm2, %v1580_v41  ;;  %3002 = vmatprep.mubr.msk.f32.mxu1 %vm3270_vm1, %v3269_v36 }
 0xbde   :  { %3017 = vmatprep.mubr.msk.f32.mxu0 %vm3270_vm1, %v3269_v36 }
 0xbe0   :  { %v1753_v42 = vpop.permute.xlu1 %1752 }
 0xbe1   :  { %3016 = vmatpush3.xpose.msk.msra.mxu0 %vm209_vm2, %v1753_v42 }
 0xbe2   :  { %3025 = vmatprep.subr.mxu0 %v3269_v36 }
 0xbe4   :  { %3018 = vmatmul.mubr.msk.f32.vlgmr.msra.gmra.mrb[14].mxu0 %vm209_vm2, %v1410_v38  ;;  %v1918_v44 = vpop.permute.xlu1 %1917 }
 0xbe5   :  { %3026 = vmatpush3.xpose.msk.msra.mxu0 %vm209_vm2, %v1920_v43  ;;  %3027 = vmatprep.mubr.msk.f32.mxu0 %vm3270_vm1, %v3269_v36 }
 0xbe6   :  { %3147 = vmatprep.subr.bf16.mxu0 %v3146_v26 }
 0xbe8   :  { %3028 = vmatmul.mubr.msk.f32.vlgmr.msra.gmra.mrb[16].mxu0 %vm209_vm2, %v1918_v44 }
 0xbe9   :  { %3149 = vmatpush3.bf16.msra.mxu0 %v3146_v26  ;;  %v2765_v26 = vld [vmem:[%s3827_s9 + $0x1] ss:$0 sm:$0xff] }
 0xbea   :  { %3151 = vmatprep.subr.bf16.mxu0 %v3150_v31 }
 0xbed   :  { %3153 = vmatpush3.bf16.msra.mxu0 %v3150_v31 }
 0xcaf   :  { %v1486_v45 = vpop.f32.mrb[14].mxu1 }
 0xcb0   :  { %v1490_v48 = vmul.f32 0.25, %v1486_v45  ;;  %v2999_v49 = vpop.f32.mrb[15].mxu1  ;;  %v1653_v50 = vpop.f32.mrb[12].mxu0 }
 0xcb1   :  { %v1657_v51 = vmul.f32 0.25, %v1653_v50  ;;  %v3009_v53 = vpop.f32.mrb[13].mxu0 }
 0xcb2   :  { %v1491_v54 = vadd.f32 %v1490_v48, %v3466_v52 }
 0xcb3   :  { %v1658_v55 = vadd.f32 %v1657_v51, %v3466_v52 }
 0xcb4   :  { %v1492_v56 = vsel %vm290_vm3, %v1491_v54, -inf }
 0xcb5   :  { %1493 = vmax.xlane.f32.xlu0 %v1492_v56  ;;  %v1659_v57 = vsel %vm290_vm3, %v1658_v55, -inf }
 0xcb6   :  { %1660 = vmax.xlane.f32.xlu1 %v1659_v57 }
 0xcb7   :  { %v1824_v58 = vpop.f32.mrb[14].mxu0 }
 0xcb8   :  { %v1828_v59 = vmul.f32 0.25, %v1824_v58  ;;  %v3019_v60 = vpop.f32.mrb[15].mxu0 }
 0xcba   :  { %v1829_v61 = vadd.f32 %v1828_v59, %v3472_v0 }
 0xcbb   :  { %v1991_v62 = vpop.f32.mrb[16].mxu0 }
 0xcbc   :  { %v1995_v63 = vmul.f32 0.25, %v1991_v62  ;;  %v3029_v1 = vpop.f32.mrb[17].mxu0  ;;  %v1830_v2 = vsel %vm290_vm3, %v1829_v61, -inf }
 0xcbd   :  { %1831 = vmax.xlane.f32.xlu0 %v1830_v2 }
 0xcbe   :  { %v1996_v3 = vadd.f32 %v1995_v63, %v3472_v0 }
 0xcc0   :  { %v1997_v52 = vsel %vm290_vm3, %v1996_v3, -inf }
 0xcc1   :  { %1998 = vmax.xlane.f32.xlu0 %v1997_v52 }
 0xcc7   :  { %1668 = vrot.lane.b32.xlu1 %v1405_v37, %s3274_s1 }
 0xccb   :  { %1839 = vrot.lane.b32.xlu1 %v1410_v38, %s3275_s21 }
 0xccf   :  { %2006 = vrot.lane.b32.xlu1 %v1410_v38, %s3274_s1 }
 0xcd7   :  { %1501 = vrot.lane.b32.xlu0 %v1405_v37, %s3275_s21 }
 0xd42   :  { %v1494_v4 = vpop.xlane.xlu0 %1493 }
 0xd43   :  { %v1495_v5 = vsub.f32 %v1491_v54, %v1494_v4  ;;  %v1661_v6 = vpop.xlane.xlu1 %1660 }
 0xd44   :  { %v1662_v7 = vsub.f32 %v1658_v55, %v1661_v6 }
 0xd45   :  { %v1496_v8 = vmul.f32 1.442695, %v1495_v5 }
 0xd46   :  { %v1663_v9 = vmul.f32 1.442695, %v1662_v7 }
 0xd47   :  { %v1669_v12 = vpop.permute.xlu1 %1668 }
 0xd48   :  { %3235 = vpow2.f32 %v1663_v9 }
 0xd49   :  { %3237 = vpow2.f32 %v1496_v8 }
 0xd4a   :  { %v1832_v0 = vpop.xlane.xlu0 %1831 }
 0xd4b   :  { %v1833_v10 = vsub.f32 %v1829_v61, %v1832_v0  ;;  %v1840_v18 = vpop.permute.xlu1 %1839  ;;  %v2759_v61 = vld [vmem:[%s3824_s7 + $0x1] ss:$0 sm:$0xff] }
 0xd4d   :  { %v1834_v11 = vmul.f32 1.442695, %v1833_v10 }
 0xd4e   :  { %v1999_v47 = vpop.xlane.xlu0 %1998 }
 0xd4f   :  { %3239 = vpow2.f32 %v1834_v11  ;;  %v2000_v46 = vsub.f32 %v1996_v3, %v1999_v47  ;;  %v2007_v22 = vpop.permute.xlu1 %2006 }
 0xd51   :  { %v2001_v13 = vmul.f32 1.442695, %v2000_v46 }
 0xd52   :  { %v3236_v14 = vpop.eup %3235  ;;  %v1502_v15 = vpop.permute.xlu0 %1501 }
 0xd53   :  { %v3238_v16 = vpop.eup %3237  ;;  %3241 = vpow2.f32 %v2001_v13  ;;  %3001 = vmatpush3.msra.mxu1 %v1502_v15  ;;  %v1665_v17 = vsel %vm290_vm3, %v3236_v14, 0.0  ;;  %v2769_v15 = vld [vmem:[%s3825_s10 + $0x38] sm:$0xff] }
 0xd54   :  { %1666 = vadd.xlane.f32.xlu0 %v1665_v17  ;;  %3003 = vmatmul.mubr.msk.f32.vlgmr.msra.gmra.mrb[16].mxu1 %vm290_vm3, %v3238_v16  ;;  %v1498_v19 = vsel %vm290_vm3, %v3238_v16, 0.0 }
 0xd55   :  { %3010 = vmatprep.subr.mxu1 %v3269_v36  ;;  %3012 = vmatprep.mubr.msk.f32.mxu1 %vm3270_vm1, %v3269_v36 }
 0xd56   :  { %3011 = vmatpush3.msra.mxu1 %v1669_v12  ;;  %v2767_v12 = vld [vmem:[%s3825_s10 + $0x28] sm:$0xff] }
 0xd57   :  { %3020 = vmatprep.subr.mxu1 %v3269_v36 }
 0xd58   :  { %1499 = vadd.xlane.f32.xlu0 %v1498_v19  ;;  %3013 = vmatmul.mubr.msk.f32.vlgmr.msra.gmra.mrb[18].mxu1 %vm290_vm3, %v3236_v14  ;;  %v2768_v14 = vld [vmem:[%s3825_s10 + $0x30] sm:$0xff] }
 0xd59   :  { %v3240_v20 = vpop.eup %3239  ;;  %3021 = vmatpush3.msra.mxu1 %v1840_v18  ;;  %3022 = vmatprep.mubr.msk.f32.mxu1 %vm3270_vm1, %v3269_v36  ;;  %v3158_v16 = vpack.c.bf16 %v2769_v15, %v2768_v14 }
 0xd5a   :  { %3030 = vmatprep.subr.mxu1 %v3269_v36  ;;  %v1836_v21 = vsel %vm290_vm3, %v3240_v20, 0.0 }
 0xd5c   :  { %1837 = vadd.xlane.f32.xlu0 %v1836_v21  ;;  %3023 = vmatmul.mubr.msk.f32.vlgmr.msra.gmra.mrb[20].mxu1 %vm290_vm3, %v3240_v20 }
 0xd5d   :  { %v3242_v23 = vpop.eup %3241  ;;  %3031 = vmatpush3.msra.mxu1 %v2007_v22  ;;  %3032 = vmatprep.mubr.msk.f32.mxu1 %vm3270_vm1, %v3269_v36 }
 0xd5e   :  { %v2003_v35 = vsel %vm290_vm3, %v3242_v23, 0.0 }
 0xd5f   :  { %2004 = vadd.xlane.f32.xlu1 %v2003_v35  ;;  %v2764_v35 = vld [vmem:[%s3826_s8 + $0x1] ss:$0 sm:$0xff] }
 0xd60   :  { %3033 = vmatmul.mubr.msk.f32.vlgmr.msra.gmra.mrb[22].mxu1 %vm290_vm3, %v3242_v23 }
 0xde1   :  { %v1667_v33 = vpop.xlane.xlu0 %1666 }
 0xde2   :  { %3243 = vrcp.f32 %v1667_v33 }
 0xde5   :  { %v1500_v50 = vpop.xlane.xlu0 %1499 }
 0xde9   :  { %v1838_v51 = vpop.xlane.xlu0 %1837 }
 0xdec   :  { %v2005_v32 = vpop.xlane.xlu1 %2004  ;;  %v3244_v38 = vpop.eup %3243 }
 0xded   :  { %3245 = vrcp.f32 %v2005_v32 }
 0xdee   :  { %3247 = vrcp.f32 %v1500_v50  ;;  %v2771_v50 = vld [vmem:[%s3829_s11 + $0x1] ss:$0 sm:$0xff] }
 0xdef   :  { %3249 = vrcp.f32 %v1838_v51 }
 0xdf7   :  { %v3246_v44 = vpop.eup %3245 }
 0xdf8   :  { %v3248_v53 = vpop.eup %3247 }
 0xdf9   :  { %v3250_v57 = vpop.eup %3249 }
 0xe27   :  { %v1573_v34 = vpop.f32.mrb[16].mxu1 }
 0xe28   :  { %v3004_v37 = vpop.f32.mrb[17].mxu1  ;;  %v1578_v54 = vmul.f32 %v3248_v53, %v1573_v34  ;;  %v2774_v34 = vld [vmem:[%s3828_s12 + $0x40] sm:$0xff] }
 0xe29   :  { %v2775_v37 = vld [vmem:[%s3828_s12 + $0x48] sm:$0xff] }
 0xe2b   :  { %v1740_v39 = vpop.f32.mrb[18].mxu1 }
 0xe2c   :  { %v1745_v40 = vmul.f32 %v3244_v38, %v1740_v39  ;;  %v3014_v41 = vpop.f32.mrb[19].mxu1  ;;  %v3162_v38 = vpack.c.bf16 %v2775_v37, %v2774_v34  ;;  %v2776_v39 = vld [vmem:[%s3828_s12 + $0x50] sm:$0xff] }
 0xe2e   :  { %1747 = vrot.lane.b32.xlu0 %v1745_v40, %s3276_s0  ;;  %3163 = vmatprep.subr.bf16.mxu0 %v3162_v38  ;;  %v2777_v40 = vld [vmem:[%s3828_s12 + $0x58] sm:$0xff] }
 0xe2f   :  { %v1911_v42 = vpop.f32.mrb[20].mxu1  ;;  %v3166_v41 = vpack.c.bf16 %v2777_v40, %v2776_v39 }
 0xe30   :  { %v3024_v43 = vpop.f32.mrb[21].mxu1  ;;  %v1916_v58 = vmul.f32 %v3250_v57, %v1911_v42  ;;  %v2778_v42 = vld [vmem:[%s3828_s12 + $0x60] sm:$0xff] }
 0xe31   :  { %v2779_v43 = vld [vmem:[%s3828_s12 + $0x68] sm:$0xff] }
 0xe33   :  { %v2078_v45 = vpop.f32.mrb[22].mxu1 }
 0xe34   :  { %v2083_v48 = vmul.f32 %v3246_v44, %v2078_v45  ;;  %v3034_v49 = vpop.f32.mrb[23].mxu1  ;;  %v3170_v44 = vpack.c.bf16 %v2779_v43, %v2778_v42  ;;  %v2780_v45 = vld [vmem:[%s3828_s12 + $0x70] sm:$0xff]  ;;  %v2783_v42 = vld [vmem:[%s3830_s13 + $0x1] ss:$0 sm:$0xff] }
 0xe36   :  { %2085 = vrot.lane.b32.xlu1 %v2083_v48, %s3276_s0  ;;  %v2781_v48 = vld [vmem:[%s3828_s12 + $0x78] sm:$0xff] }
 0xe37   :  { %v3174_v49 = vpack.c.bf16 %v2781_v48, %v2780_v45 }
 0xea0   :  { %v1748_v55 = vpop.permute.xlu0 %1747 }
 0xea1   :  { %v1750_v56 = vsel %vm209_vm2, %v1578_v54, %v1748_v55 }
 0xea2   :  { %3043 = vmatprep.mubr.msk.f32.mxu0 %vm70_vm0, %v1750_v56 }
 0xea8   :  { %v2086_v59 = vpop.permute.xlu1 %2085 }
 0xea9   :  { %v2088_v60 = vsel %vm209_vm2, %v1916_v58, %v2086_v59 }
 0xeaa   :  { %3044 = vmatmul.mubr.msk.f32.vlgmr.msra.gmra.mrb[18].mxu0 %vm70_vm0, %v2088_v60 }
 0xeab   :  { %3165 = vmatpush3.bf16.msra.mxu0 %v3162_v38 }
 0xeac   :  { %3167 = vmatprep.subr.bf16.mxu0 %v3166_v41 }
 0xeaf   :  { %3169 = vmatpush3.bf16.msra.mxu0 %v3166_v41 }
 0xeb0   :  { %3171 = vmatprep.subr.bf16.mxu0 %v3170_v44 }
 0xeb3   :  { %3173 = vmatpush3.bf16.msra.mxu0 %v3170_v44 }
 0xeb4   :  { %3175 = vmatprep.subr.bf16.mxu0 %v3174_v49 }
 0xeb7   :  { %3177 = vmatpush3.bf16.msra.mxu0 %v3174_v49 }
 0xf7d   :  { %v3045_v62 = vpop.f32.mrb[18].mxu0 }
 0xf7e   :  { %v2180_v63 = vadd.f32 %v3045_v62, %v2759_v61  ;;  %v2174_v1 = vpop.f32.mrb[19].mxu0 }
 0xf7f   :  { %v2175_v2 = vadd.f32 %v2759_v61, %v2174_v1 }
 0xf80   :  { %v2184_v3 = vadd.f32 %v2180_v63, %v3618_v30 }
 0xf81   :  { %v2183_v52 = vadd.f32 %v2175_v2, %v3616_v29  ;;  %v2766_v29 = vld [vmem:[%s3825_s10 + $0x20] sm:$0xff] }
 0xf82   :  { %v2192_v4 = vsel %vm70_vm0, %v2184_v3, 0.0  ;;  %v3154_v13 = vpack.c.bf16 %v2767_v12, %v2766_v29 }
 0xf83   :  { %2193 = vadd.xlane.f32.xlu0 %v2192_v4  ;;  %v2189_v5 = vsel %vm70_vm0, %v2183_v52, 0.0 }
 0xf84   :  { %2190 = vadd.xlane.f32.xlu1 %v2189_v5  ;;  %3155 = vmatprep.subr.bf16.mxu1 %v3154_v13 }
 0xf85   :  { %3157 = vmatpush3.bf16.msra.mxu1 %v3154_v13 }
 0xf86   :  { %3159 = vmatprep.subr.bf16.mxu1 %v3158_v16 }
 0xf89   :  { %3161 = vmatpush3.bf16.msra.mxu1 %v3158_v16 }
0x1010   :  { %v2194_v6 = vpop.xlane.xlu0 %2193 }
0x1011   :  { %v2196_v7 = vmul.f32 0.03125, %v2194_v6  ;;  %v2191_v8 = vpop.xlane.xlu1 %2190 }
0x1012   :  { %v2195_v9 = vmul.f32 0.03125, %v2191_v8 }
0x1013   :  { %v2198_v0 = vsub.f32 %v2184_v3, %v2196_v7 }
0x1014   :  { %v2197_v10 = vsub.f32 %v2183_v52, %v2195_v9 }
0x1015   :  { %v2200_v11 = vmul.f32 %v2198_v0, %v2198_v0 }
0x1016   :  { %v2199_v47 = vmul.f32 %v2197_v10, %v2197_v10 }
0x1017   :  { %v2204_v46 = vsel %vm70_vm0, %v2200_v11, 0.0 }
0x1018   :  { %2205 = vadd.xlane.f32.xlu1 %v2204_v46  ;;  %v2201_v30 = vsel %vm70_vm0, %v2199_v47, 0.0 }
0x1019   :  { %2202 = vadd.xlane.f32.xlu0 %v2201_v30 }
0x10a5   :  { %v2206_v17 = vpop.xlane.xlu1 %2205 }
0x10a6   :  { %v2208_v18 = vmul.f32 0.03125, %v2206_v17  ;;  %v2203_v19 = vpop.xlane.xlu0 %2202 }
0x10a7   :  { %v2207_v20 = vmul.f32 0.03125, %v2203_v19 }
0x10a8   :  { %v2210_v21 = vadd.f32 1e-12, %v2208_v18 }
0x10a9   :  { %v2209_v22 = vadd.f32 1e-12, %v2207_v20 }
0x10aa   :  { %3251 = vrsqrt.f32 %v2210_v21 }
0x10ab   :  { %3253 = vrsqrt.f32 %v2209_v22 }
0x10b4   :  { %v3252_v23 = vpop.eup %3251 }
0x10b5   :  { %v3254_v33 = vpop.eup %3253  ;;  %v2214_v24 = vmul.f32 %v3252_v23, %v2198_v0 }
0x10b6   :  { %v2213_v25 = vmul.f32 %v3254_v33, %v2197_v10 }
0x10b7   :  { %v2222_v27 = vmul.f32 %v2764_v35, %v2214_v24 }
0x10b8   :  { %v2221_v28 = vmul.f32 %v2764_v35, %v2213_v25 }
0x10b9   :  { %v3728_v32 = vadd.f32 %v2765_v26, %v2222_v27 }
0x10ba   :  { %v3726_v31 = vadd.f32 %v2765_v26, %v2221_v28 }
0x10bc   :  { %3054 = vmatprep.mubr.msk.f32.mxu1 %vm70_vm0, %v3726_v31 }
0x10bd   :  { %3055 = vmatmul.mubr.msk.f32.vlgmr.msra.gmra.mrb[24].mxu1 %vm70_vm0, %v3728_v32 }
0x10be   :  { %3084 = vmatprep.mubr.msk.f32.mxu1 %vm3270_vm1, %v3269_v36 }
0x1190   :  { %v3056_v51 = vpop.f32.mrb[24].mxu1 }
0x1191   :  { %v2322_v53 = vadd.f32 %v3056_v51, %v2771_v50  ;;  %v2316_v54 = vpop.f32.mrb[25].mxu1 }
0x1192   :  { %v2317_v55 = vadd.f32 %v2771_v50, %v2316_v54 }
0x1193   :  { %v2328_v56 = vmul.f32 0.70710677, %v2322_v53  ;;  %v2326_v39 = vmul.f32 0.5, %v2322_v53 }
0x1194   :  { %v2327_v57 = vmul.f32 0.70710677, %v2317_v55  ;;  %v2325_v37 = vmul.f32 0.5, %v2317_v55 }
0x1195   :  { %v2330_v58 = vand.u32 2147483647, %v2328_v56  ;;  %vm2370_vm7 = vcmp.ge.f32.partialorder %v2328_v56, 0.0 }
0x1196   :  { %v2329_v59 = vand.u32 2147483647, %v2327_v57  ;;  %vm2369_vm8 = vcmp.ge.f32.partialorder %v2327_v57, 0.0 }
0x1197   :  { %v2332_v60 = vmul.f32 0.3275911, %v2330_v58  ;;  %v2358_v1 = vsub.f32 0.0, %v2330_v58 }
0x1198   :  { %v2331_v61 = vmul.f32 0.3275911, %v2329_v59  ;;  %v2357_v2 = vsub.f32 0.0, %v2329_v59 }
0x1199   :  { %v2334_v62 = vadd.f32 1.0, %v2332_v60  ;;  %v2360_v52 = vmul.f32 %v2358_v1, %v2330_v58 }
0x119a   :  { %v2333_v63 = vadd.f32 1.0, %v2331_v61  ;;  %v2359_v6 = vmul.f32 %v2357_v2, %v2329_v59  ;;  %v2532_v2 = vld [vmem:[%s3833_s16 + $0x10] sm:$0xff] }
0x119b   :  { %3255 = vrcp.f32 %v2334_v62  ;;  %v2363_v9 = vmul.f32 1.442695, %v2360_v52  ;;  %v3277_v52 = vmov 0.0|0.0  }
0x119c   :  { %3257 = vrcp.f32 %v2333_v63  ;;  %v2361_v11 = vmul.f32 1.442695, %v2359_v6  ;;  %v2531_v63 = vld [vmem:[%s3833_s16 + $0x8] sm:$0xff]  ;;  %3178 = vmatprep.subr.bf16.mxu1 %v3277_v52 }
0x119d   :  { %3259 = vpow2.f32 %v2363_v9 }
0x119e   :  { %3261 = vpow2.f32 %v2361_v11  ;;  %v2788_v11 = vld [vmem:[%s3831_s14 + $0x1] ss:$0 sm:$0xff] }
0x11a5   :  { %v3256_v3 = vpop.eup %3255 }
0x11a6   :  { %v3258_v4 = vpop.eup %3257  ;;  %v2340_v5 = vmul.f32 1.0614054, %v3256_v3 }
0x11a7   :  { %v2339_v7 = vmul.f32 1.0614054, %v3258_v4  ;;  %v3260_v20 = vpop.eup %3259 }
0x11a8   :  { %v2342_v8 = vadd.f32 -1.4531521, %v2340_v5  ;;  %v3262_v22 = vpop.eup %3261 }
0x11a9   :  { %v2341_v0 = vadd.f32 -1.4531521, %v2339_v7 }
0x11aa   :  { %v2344_v10 = vmul.f32 %v3256_v3, %v2342_v8 }
0x11ab   :  { %v2343_v47 = vmul.f32 %v3258_v4, %v2341_v0 }
0x11ac   :  { %v2346_v46 = vadd.f32 1.4214138, %v2344_v10 }
0x11ad   :  { %v2345_v30 = vadd.f32 1.4214138, %v2343_v47 }
0x11ae   :  { %v2348_v29 = vmul.f32 %v3256_v3, %v2346_v46 }
0x11af   :  { %v2347_v12 = vmul.f32 %v3258_v4, %v2345_v30  ;;  %v2789_v30 = vld [vmem:[%s3832_s15 + $0x1] ss:$0 sm:$0xff] }
0x11b0   :  { %v2350_v13 = vadd.f32 -0.28449672, %v2348_v29 }
0x11b1   :  { %v2349_v14 = vadd.f32 -0.28449672, %v2347_v12 }
0x11b2   :  { %v2352_v15 = vmul.f32 %v3256_v3, %v2350_v13 }
0x11b3   :  { %v2351_v16 = vmul.f32 %v3258_v4, %v2349_v14 }
0x11b4   :  { %v2354_v17 = vadd.f32 0.2548296, %v2352_v15 }
0x11b5   :  { %v2353_v18 = vadd.f32 0.2548296, %v2351_v16 }
0x11b6   :  { %v2356_v19 = vmul.f32 %v3256_v3, %v2354_v17  ;;  %v2533_v3 = vld [vmem:[%s3833_s16 + $0x18] sm:$0xff] }
0x11b7   :  { %v2355_v21 = vmul.f32 %v3258_v4, %v2353_v18  ;;  %v3182_v4 = vpack.c.bf16 %v2533_v3, %v2532_v2  ;;  %v2615_v18 = vld [vmem:[%s3834_s18] sm:$0xff] }
0x11b8   :  { %v2366_v23 = vmul.f32 %v3260_v20, %v2356_v19  ;;  %v2616_v19 = vld [vmem:[%s3834_s18 + $0x8] sm:$0xff]  ;;  %v2617_v20 = vld [vmem:[%s3834_s18 + $0x10] sm:$0xff] }
0x11b9   :  { %v2365_v35 = vmul.f32 %v3262_v22, %v2355_v21  ;;  %v3185_v21 = vpack.c.bf16 %v2616_v19, %v2615_v18  ;;  %v2618_v22 = vld [vmem:[%s3834_s18 + $0x18] sm:$0xff] }
0x11ba   :  { %v2368_v33 = vsub.f32 1.0, %v2366_v23  ;;  %v3188_v23 = vpack.c.bf16 %v2618_v22, %v2617_v20 }
0x11bb   :  { %v2367_v24 = vsub.f32 1.0, %v2365_v35 }
0x11bc   :  { %v2372_v25 = vsub.f32 0.0, %v2368_v33 }
0x11bd   :  { %v2371_v26 = vsub.f32 0.0, %v2367_v24 }
0x11be   :  { %v2374_v27 = vsel %vm2370_vm7, %v2368_v33, %v2372_v25 }
0x11bf   :  { %v2376_v28 = vadd.f32 1.0, %v2374_v27  ;;  %v2373_v34 = vsel %vm2369_vm8, %v2367_v24, %v2371_v26  ;;  %v2792_v26 = vld [vmem:[%s3836_s19] ss:$0 sm:$0xff] }
0x11c0   :  { %v2375_v38 = vadd.f32 1.0, %v2373_v34 }
0x11c1   :  { %v2378_v41 = vmul.f32 %v2376_v28, %v2326_v39 }
0x11c2   :  { %v2377_v40 = vmul.f32 %v2375_v38, %v2325_v37 }
0x11c4   :  { %3073 = vmatprep.mubr.msk.f32.mxu0 %vm1191_vm6, %v2377_v40 }
0x11c5   :  { %3074 = vmatmul.mubr.msk.f32.vlgmr.msra.gmra.mrb[20].mxu0 %vm1191_vm6, %v2378_v41 }
0x1298   :  { %v3075_v43 = vpop.f32.mrb[20].mxu0 }
0x1299   :  { %v2474_v44 = vadd.f32 %v3075_v43, %v2783_v42  ;;  %v2468_v45 = vpop.f32.mrb[21].mxu0 }
0x129a   :  { %v2469_v48 = vadd.f32 %v2783_v42, %v2468_v45 }
0x129b   :  { %v2478_v49 = vadd.f32 %v2474_v44, %v3728_v32 }
0x129c   :  { %v2477_v50 = vadd.f32 %v2469_v48, %v3726_v31  ;;  %v2530_v31 = vld [vmem:[%s3833_s16] sm:$0xff] }
0x129d   :  { %v2486_v51 = vsel %vm70_vm0, %v2478_v49, 0.0  ;;  %v3179_v1 = vpack.c.bf16 %v2531_v63, %v2530_v31 }
0x129e   :  { %2487 = vadd.xlane.f32.xlu0 %v2486_v51  ;;  %v2483_v53 = vsel %vm70_vm0, %v2477_v50, 0.0 }
0x129f   :  { %2484 = vadd.xlane.f32.xlu1 %v2483_v53  ;;  %3180 = vmatpush3.bf16.msra.mxu1 %v3179_v1 }
0x12a0   :  { %3181 = vmatprep.subr.bf16.mxu1 %v3277_v52 }
0x12a3   :  { %3183 = vmatpush3.bf16.msra.mxu1 %v3182_v4 }
0x12a4   :  { %3184 = vmatprep.subr.bf16.mxu1 %v3277_v52 }
0x132b   :  { %v2488_v54 = vpop.xlane.xlu0 %2487 }
0x132c   :  { %v2490_v55 = vmul.f32 0.03125, %v2488_v54  ;;  %v2485_v56 = vpop.xlane.xlu1 %2484 }
0x132d   :  { %v2489_v57 = vmul.f32 0.03125, %v2485_v56 }
0x132e   :  { %v2492_v58 = vsub.f32 %v2478_v49, %v2490_v55 }
0x132f   :  { %v2491_v59 = vsub.f32 %v2477_v50, %v2489_v57 }
0x1330   :  { %v2494_v60 = vmul.f32 %v2492_v58, %v2492_v58 }
0x1331   :  { %v2493_v61 = vmul.f32 %v2491_v59, %v2491_v59 }
0x1332   :  { %v2498_v62 = vsel %vm70_vm0, %v2494_v60, 0.0 }
0x1333   :  { %2499 = vadd.xlane.f32.xlu0 %v2498_v62  ;;  %v2495_v32 = vsel %vm70_vm0, %v2493_v61, 0.0 }
0x1334   :  { %2496 = vadd.xlane.f32.xlu1 %v2495_v32 }
0x13c0   :  { %v2500_v5 = vpop.xlane.xlu0 %2499 }
0x13c1   :  { %v2502_v6 = vmul.f32 0.03125, %v2500_v5  ;;  %v2497_v7 = vpop.xlane.xlu1 %2496 }
0x13c2   :  { %v2501_v8 = vmul.f32 0.03125, %v2497_v7 }
0x13c3   :  { %v2504_v9 = vadd.f32 1e-12, %v2502_v6 }
0x13c4   :  { %v2503_v0 = vadd.f32 1e-12, %v2501_v8 }
0x13c5   :  { %3263 = vrsqrt.f32 %v2504_v9 }
0x13c6   :  { %3265 = vrsqrt.f32 %v2503_v0 }
0x13cf   :  { %v3264_v10 = vpop.eup %3263 }
0x13d0   :  { %v3266_v47 = vpop.eup %3265  ;;  %v2508_v46 = vmul.f32 %v3264_v10, %v2492_v58 }
0x13d1   :  { %v2507_v29 = vmul.f32 %v3266_v47, %v2491_v59 }
0x13d2   :  { %v2516_v12 = vmul.f32 %v2788_v11, %v2508_v46 }
0x13d3   :  { %v2515_v13 = vmul.f32 %v2788_v11, %v2507_v29 }
0x13d4   :  { %v2524_v14 = vadd.f32 %v2789_v30, %v2516_v12 }
0x13d5   :  { %v2523_v15 = vadd.f32 %v2789_v30, %v2515_v13 }
0x13d6   :  { %v2526_v16 = vrot.slane %v2524_v14, 7 }
0x13d8   :  { %v2529_v17 = vsel %vm2528_vm9, %v2523_v15, %v2526_v16 }
0x13d9   :  { %3085 = vmatmul.mubr.msk.f32.vlgmr.msra.gmra.mrb[26].mxu1 %vm70_vm0, %v2529_v17 }
0x13da   :  { %3095 = vmatprep.mubr.msk.f32.mxu1 %vm3270_vm1, %v3269_v36  ;;  %3186 = vmatpush3.bf16.msra.mxu1 %v3185_v21  ;;  %v2790_v36 = vld [vmem:[%s3835_s17] ss:$0 sm:$0xff] }
0x13db   :  { %3187 = vmatprep.subr.bf16.mxu1 %v3277_v52 }
0x13de   :  { %3189 = vmatpush3.bf16.msra.mxu1 %v3188_v23 }
0x14ac   :  { %v2610_v35 = vpop.f32.mrb[26].mxu1 }
0x14ad   :  { %v2611_v33 = vadd.f32 %v2790_v36, %v2610_v35  ;;  %v3086_v24 = vpop.f32.mrb[27].mxu1 }
0x14af   :  { %3267 = vtanh.f32 %v2611_v33 }
0x14b9   :  { %v3268_v25 = vpop.eup %3267 }
0x14ba   :  { %3096 = vmatmul.mubr.msk.f32.vlgmr.msra.gmra.mrb[28].mxu1 %vm70_vm0, %v3268_v25 }
0x158d   :  { %v2695_v27 = vpop.f32.mrb[28].mxu1 }
0x158e   :  { %v2696_v28 = vadd.f32 %v2792_v26, %v2695_v27  ;;  %v3097_v34 = vpop.f32.mrb[29].mxu1 }
0x1590   :  { %2699 = vst [vmem:[%s3837_s20] sm:$0x3] %v2696_v28 }

</bundles_post_ra>
